<compile_context>
chip_gen: v7x
topology: tpu7x:2x2x1
jax: 0.10.0
libtpu: 0.0.40
codegen_flags: <defaults>
</compile_context>

<pallas_src>
import functools

import jax
import jax.numpy as jnp
from jax.experimental import pallas as pl
from jax.experimental.pallas import tpu as pltpu


def _mhsa_kernel(x_ref, w_ref, b_ref, o_ref, *, heads: int, dh: int, nb: int, s: int):
    """One grid step processes `nb` batch elements packed along the lane axis.

    x_ref : (1, C, nb*S)  bf16 activations, channels-major, batch-packed lanes
    w_ref : (3C, C)       bf16 fused [Wq; Wk; Wv] 1x1-conv weights
    b_ref : (3C, 1)       f32 fused [bq; bk; bv] biases
    o_ref : (1, C, nb*S)  output slab (same packing as the input)
    """
    c = heads * dh

    x = x_ref[0]                                              # (C, nb*S) bf16

    # Fused QKV projection: one lane-dense MXU matmul, bias added in f32.
    qkv = jnp.dot(w_ref[...], x, preferred_element_type=jnp.float32) + b_ref[...]
    # Single bf16 cast of the whole (3C, nb*S) slab; q/k/v are slices of it.
    qkv_bf = qkv.astype(jnp.bfloat16)

    outs = []
    for b in range(nb):                                       # tiny static loop
        cols = slice(b * s, (b + 1) * s)
        q = qkv_bf[0 * c:1 * c, cols].reshape(heads, dh, s)   # (H, dh, S)
        k = qkv_bf[1 * c:2 * c, cols].reshape(heads, dh, s)   # (H, dh, S)
        v = qkv_bf[2 * c:3 * c, cols].reshape(heads, dh, s)   # (H, dh, S)

        # energy[h, s, t] = sum_d q[h, d, s] * k[h, d, t]
        # (transposed-LHS batched contraction: no explicit transpose of q)
        energy = jnp.einsum("hds,hdt->hst", q, k,
                            preferred_element_type=jnp.float32)   # (H, S, S) f32

        # Softmax over the key axis in f32; normalization deferred past PV.
        m = jnp.max(energy, axis=-1, keepdims=True)
        p = jnp.exp(energy - m)                                # (H, S, S) f32
        denom = jnp.sum(p, axis=-1)                            # (H, S)   f32 accum

        # Unnormalized PV: out_un[h, d, s] = sum_t v[h, d, t] * p[h, s, t]
        out_un = jnp.einsum("hdt,hst->hds", v, p.astype(jnp.bfloat16),
                            preferred_element_type=jnp.float32)   # (H, dh, S)

        # Deferred normalization: O(H*dh*S) scale instead of O(H*S^2) multiply.
        r = pl.reciprocal(denom, approx=True)                  # (H, S)   EUP
        out_b = out_un * r[:, None, :]                         # (H, dh, S)
        outs.append(out_b.reshape(c, s))

    out_slab = outs[0] if nb == 1 else jnp.concatenate(outs, axis=-1)
    # One lane-dense (C, nb*S) store per grid step.
    o_ref[0] = out_slab.astype(o_ref.dtype)


def _pick_nb(n: int, s: int) -> int:
    """Smallest divisor of n making the packed lane width nb*S >= 128."""
    for nb in range(1, n + 1):
        if n % nb == 0 and nb * s >= 128:
            return nb
    return n


@functools.partial(jax.jit, static_argnames=("heads",))
def mhsa_pallas(x_nchw, wq, bq, wk, bk, wv, bv, heads):
    """x_nchw: (N, C, W, H) f32. Conv weights: (C, C, 1, 1); biases: (C,)."""
    n, c, w, h = x_nchw.shape
    assert c % heads == 0
    dh = c // heads
    s = w * h
    nb = _pick_nb(n, s)
    g = n // nb
    lanes = nb * s

    # Pack to channels-major slabs (G, C, nb*S) and cast to bf16 (one fused
    # XLA pass; bf16 also halves the kernel's per-step input DMA bytes).
    x_pack = (x_nchw.reshape(g, nb, c, s)
              .transpose(0, 2, 1, 3)
              .reshape(g, c, lanes)
              .astype(jnp.bfloat16))

    # Fused projection parameters (hoisted / fused under jit).
    wqkv = jnp.concatenate(
        [wq[:, :, 0, 0], wk[:, :, 0, 0], wv[:, :, 0, 0]], axis=0).astype(jnp.bfloat16)
    bqkv = jnp.concatenate([bq, bk, bv], axis=0).reshape(3 * c, 1).astype(jnp.float32)

    kernel = functools.partial(_mhsa_kernel, heads=heads, dh=dh, nb=nb, s=s)

    # VMEM budget derived from the per-step footprint (double-buffered I/O,
    # resident weights, f32 intermediates), with 2x headroom; capped so the
    # scoped limit stays within v7x's 64 MiB physical VMEM.
    blk_bytes = (
        2 * (c * lanes * 2)                      # x block (bf16, double-buffered)
        + 2 * (c * lanes * 4)                    # out block (f32, double-buffered)
        + 2 * (3 * c * c * 2) + 2 * (3 * c * 4)  # fused weights + bias
        + 3 * c * lanes * (4 + 2)                # qkv f32 + bf16 copies
        + 2 * heads * s * s * 4                  # energy + p (per element in flight)
        + 4 * c * lanes * 4                      # misc intermediates / slack
    )
    vmem_limit = int(min(64 * 2**20, max(32 * 2**20, 2 * blk_bytes)))

    out_pack = pl.pallas_call(
        kernel,
        out_shape=jax.ShapeDtypeStruct((g, c, lanes), x_nchw.dtype),
        grid=(g,),
        in_specs=[
            pl.BlockSpec((1, c, lanes), lambda i: (i, 0, 0)),   # packed activations
            pl.BlockSpec((3 * c, c), lambda i: (0, 0)),         # fused Wqkv (invariant)
            pl.BlockSpec((3 * c, 1), lambda i: (0, 0)),         # fused bias (invariant)
        ],
        out_specs=pl.BlockSpec((1, c, lanes), lambda i: (i, 0, 0)),
        compiler_params=pltpu.CompilerParams(
            dimension_semantics=("parallel",),
            vmem_limit_bytes=vmem_limit,
        ),
    )(x_pack, wqkv, bqkv)

    # Undo the packing (cheap wrapper reshape/transpose) back to NCHW.
    return (out_pack.reshape(g, c, nb, s)
            .transpose(0, 2, 1, 3)
            .reshape(n, c, w, h))


def mhsa_reference(x_nchw, wq, bq, wk, bk, wv, bv, heads):
    """Pure-JAX f32 reference mirroring the PyTorch forward (pos_emb=False)."""
    n, c, w, h = x_nchw.shape
    dh = c // heads
    s = w * h

    def conv1x1(x, wgt, b):
        xf = x.reshape(n, c, s)
        return jnp.einsum("oc,ncs->nos", wgt[:, :, 0, 0], xf) + b[None, :, None]

    q = conv1x1(x_nchw, wq, bq).reshape(n, heads, dh, s)
    k = conv1x1(x_nchw, wk, bk).reshape(n, heads, dh, s)
    v = conv1x1(x_nchw, wv, bv).reshape(n, heads, dh, s)

    cc = jnp.einsum("nhds,nhdt->nhst", q, k)          # (N, heads, S, S)
    attn = jax.nn.softmax(cc, axis=-1)
    out = jnp.einsum("nhdt,nhst->nhds", v, attn)      # (N, heads, dh, S)
    return out.reshape(n, c, w, h)


if __name__ == "__main__":
    # Small deterministic config: batch=2, C=32, spatial 8x8 (S=64), heads=4.
    # With S=64 the wrapper packs Nb=2 batch elements per grid step (128 lanes).
    N, C, W, H = 2, 32, 8, 8
    HEADS = 4

    key = jax.random.PRNGKey(0)
    kx, kq, kbq, kk, kbk, kv, kbv = jax.random.split(key, 7)

    x = jax.random.normal(kx, (N, C, W, H), dtype=jnp.float32)
    # Conv2d(n_dims, n_dims, kernel_size=1) parameter shapes.
    wq = jax.random.normal(kq, (C, C, 1, 1), dtype=jnp.float32) * 0.1
    bq = jax.random.normal(kbq, (C,), dtype=jnp.float32) * 0.1
    wk = jax.random.normal(kk, (C, C, 1, 1), dtype=jnp.float32) * 0.1
    bk = jax.random.normal(kbk, (C,), dtype=jnp.float32) * 0.1
    wv = jax.random.normal(kv, (C, C, 1, 1), dtype=jnp.float32) * 0.1
    bv = jax.random.normal(kbv, (C,), dtype=jnp.float32) * 0.1

    out = mhsa_pallas(x, wq, bq, wk, bk, wv, bv, heads=HEADS)
    out = jax.block_until_ready(out)

    ref = mhsa_reference(x, wq, bq, wk, bk, wv, bv, HEADS)
    assert out.shape == (N, C, W, H)
    # bf16 MXU inputs (f32 accumulation) + approx reciprocal -> looser tolerance.
    assert jnp.allclose(out, ref, atol=3e-2, rtol=3e-2), "Pallas MHSA mismatch vs reference"

    print("KERNEL_OK")
</pallas_src>

<mosaic_0001>
module attributes {stable_mosaic.version = 11 : i64} {
  func.func @_mhsa_kernel(%arg0: i32, %arg1: memref<1x32x128xbf16, #tpu.memory_space<vmem>>, %arg2: memref<96x32xbf16, #tpu.memory_space<vmem>>, %arg3: memref<96x1xf32, #tpu.memory_space<vmem>>, %arg4: memref<1x32x128xf32, #tpu.memory_space<vmem>>) attributes {dimension_semantics = [#tpu.dimension_semantics<parallel>], iteration_bounds = array<i64: 1>, scalar_prefetch = 0 : i64, scratch_operands = 0 : i64, tpu.core_type = #tpu.core_type<tc>, window_params = [{transform_indices = @transform_0, window_bounds = array<i64: 1, 32, 128>}, {pipeline_mode = #tpu.pipeline_mode<synchronous>, transform_indices = @transform_1, window_bounds = array<i64: 96, 32>}, {pipeline_mode = #tpu.pipeline_mode<synchronous>, transform_indices = @transform_2, window_bounds = array<i64: 96, 1>}, {transform_indices = @transform_3, window_bounds = array<i64: 1, 32, 128>}]} {
    %c0 = arith.constant 0 : index
    %c0_0 = arith.constant 0 : index
    %c0_1 = arith.constant 0 : index
    %0 = vector.load %arg1[%c0, %c0_0, %c0_1] : memref<1x32x128xbf16, #tpu.memory_space<vmem>>, vector<1x32x128xbf16>
    %1 = vector.shape_cast %0 : vector<1x32x128xbf16> to vector<32x128xbf16>
    %c0_2 = arith.constant 0 : index
    %c0_3 = arith.constant 0 : index
    %2 = vector.load %arg2[%c0_2, %c0_3] : memref<96x32xbf16, #tpu.memory_space<vmem>>, vector<96x32xbf16>
    %cst = arith.constant dense<0.000000e+00> : vector<96x128xf32>
    %3 = tpu.matmul %2, %1, %cst {dimension_numbers = #tpu.dot_dimension_numbers<[1], [0], [0], [1], [0, 0, 1, 1], [], []>} : vector<96x32xbf16>, vector<32x128xbf16>, vector<96x128xf32> -> vector<96x128xf32>
    %c0_4 = arith.constant 0 : index
    %c0_5 = arith.constant 0 : index
    %4 = vector.load %arg3[%c0_4, %c0_5] : memref<96x1xf32, #tpu.memory_space<vmem>>, vector<96x1xf32>
    %5 = vector.broadcast %4 : vector<96x1xf32> to vector<96x128xf32>
    %6 = arith.addf %3, %5 : vector<96x128xf32>
    %7 = arith.truncf %6 : vector<96x128xf32> to vector<96x128xbf16>
    %8 = vector.extract_strided_slice %7 {offsets = [0, 0], sizes = [32, 64], strides = [1, 1]} : vector<96x128xbf16> to vector<32x64xbf16>
    %9 = vector.shape_cast %8 : vector<32x64xbf16> to vector<4x8x64xbf16>
    %10 = vector.extract_strided_slice %7 {offsets = [32, 0], sizes = [32, 64], strides = [1, 1]} : vector<96x128xbf16> to vector<32x64xbf16>
    %11 = vector.shape_cast %10 : vector<32x64xbf16> to vector<4x8x64xbf16>
    %12 = vector.extract_strided_slice %7 {offsets = [64, 0], sizes = [32, 64], strides = [1, 1]} : vector<96x128xbf16> to vector<32x64xbf16>
    %13 = vector.shape_cast %12 : vector<32x64xbf16> to vector<4x8x64xbf16>
    "tpu.trace_start"() <{level = 10 : i32, message = "hds,hdt->hst"}> : () -> ()
    %cst_6 = arith.constant dense<0.000000e+00> : vector<4x64x64xf32>
    %14 = tpu.matmul %9, %11, %cst_6 {dimension_numbers = #tpu.dot_dimension_numbers<[1], [1], [2], [2], [0, 0, 0, 2, 1, 2], [0], [0]>} : vector<4x8x64xbf16>, vector<4x8x64xbf16>, vector<4x64x64xf32> -> vector<4x64x64xf32>
    "tpu.trace_stop"() : () -> ()
    %cst_7 = arith.constant dense<0xFF800000> : vector<4x64xf32>
    %15 = vector.multi_reduction <maximumf>, %14, %cst_7 [2] : vector<4x64x64xf32> to vector<4x64xf32>
    %16 = vector.shape_cast %15 : vector<4x64xf32> to vector<4x64x1xf32>
    %17 = vector.broadcast %16 : vector<4x64x1xf32> to vector<4x64x64xf32>
    %18 = arith.subf %14, %17 : vector<4x64x64xf32>
    %19 = math.exp %18 : vector<4x64x64xf32>
    %cst_8 = arith.constant dense<0.000000e+00> : vector<4x64xf32>
    %20 = vector.multi_reduction <add>, %19, %cst_8 [2] : vector<4x64x64xf32> to vector<4x64xf32>
    %21 = arith.truncf %19 : vector<4x64x64xf32> to vector<4x64x64xbf16>
    "tpu.trace_start"() <{level = 10 : i32, message = "hdt,hst->hds"}> : () -> ()
    %cst_9 = arith.constant dense<0.000000e+00> : vector<4x8x64xf32>
    %22 = tpu.matmul %13, %21, %cst_9 {dimension_numbers = #tpu.dot_dimension_numbers<[2], [2], [1], [1], [0, 0, 0, 1, 1, 1], [0], [0]>} : vector<4x8x64xbf16>, vector<4x64x64xbf16>, vector<4x8x64xf32> -> vector<4x8x64xf32>
    "tpu.trace_stop"() : () -> ()
    %23 = tpu.reciprocal %20 {approx = true} : vector<4x64xf32> -> vector<4x64xf32>
    %24 = vector.shape_cast %23 : vector<4x64xf32> to vector<4x1x64xf32>
    %25 = vector.broadcast %24 : vector<4x1x64xf32> to vector<4x8x64xf32>
    %26 = arith.mulf %22, %25 : vector<4x8x64xf32>
    %27 = vector.shape_cast %26 : vector<4x8x64xf32> to vector<32x64xf32>
    %28 = vector.extract_strided_slice %7 {offsets = [0, 64], sizes = [32, 64], strides = [1, 1]} : vector<96x128xbf16> to vector<32x64xbf16>
    %29 = vector.shape_cast %28 : vector<32x64xbf16> to vector<4x8x64xbf16>
    %30 = vector.extract_strided_slice %7 {offsets = [32, 64], sizes = [32, 64], strides = [1, 1]} : vector<96x128xbf16> to vector<32x64xbf16>
    %31 = vector.shape_cast %30 : vector<32x64xbf16> to vector<4x8x64xbf16>
    %32 = vector.extract_strided_slice %7 {offsets = [64, 64], sizes = [32, 64], strides = [1, 1]} : vector<96x128xbf16> to vector<32x64xbf16>
    %33 = vector.shape_cast %32 : vector<32x64xbf16> to vector<4x8x64xbf16>
    "tpu.trace_start"() <{level = 10 : i32, message = "hds,hdt->hst"}> : () -> ()
    %cst_10 = arith.constant dense<0.000000e+00> : vector<4x64x64xf32>
    %34 = tpu.matmul %29, %31, %cst_10 {dimension_numbers = #tpu.dot_dimension_numbers<[1], [1], [2], [2], [0, 0, 0, 2, 1, 2], [0], [0]>} : vector<4x8x64xbf16>, vector<4x8x64xbf16>, vector<4x64x64xf32> -> vector<4x64x64xf32>
    "tpu.trace_stop"() : () -> ()
    %cst_11 = arith.constant dense<0xFF800000> : vector<4x64xf32>
    %35 = vector.multi_reduction <maximumf>, %34, %cst_11 [2] : vector<4x64x64xf32> to vector<4x64xf32>
    %36 = vector.shape_cast %35 : vector<4x64xf32> to vector<4x64x1xf32>
    %37 = vector.broadcast %36 : vector<4x64x1xf32> to vector<4x64x64xf32>
    %38 = arith.subf %34, %37 : vector<4x64x64xf32>
    %39 = math.exp %38 : vector<4x64x64xf32>
    %cst_12 = arith.constant dense<0.000000e+00> : vector<4x64xf32>
    %40 = vector.multi_reduction <add>, %39, %cst_12 [2] : vector<4x64x64xf32> to vector<4x64xf32>
    %41 = arith.truncf %39 : vector<4x64x64xf32> to vector<4x64x64xbf16>
    "tpu.trace_start"() <{level = 10 : i32, message = "hdt,hst->hds"}> : () -> ()
    %cst_13 = arith.constant dense<0.000000e+00> : vector<4x8x64xf32>
    %42 = tpu.matmul %33, %41, %cst_13 {dimension_numbers = #tpu.dot_dimension_numbers<[2], [2], [1], [1], [0, 0, 0, 1, 1, 1], [0], [0]>} : vector<4x8x64xbf16>, vector<4x64x64xbf16>, vector<4x8x64xf32> -> vector<4x8x64xf32>
    "tpu.trace_stop"() : () -> ()
    %43 = tpu.reciprocal %40 {approx = true} : vector<4x64xf32> -> vector<4x64xf32>
    %44 = vector.shape_cast %43 : vector<4x64xf32> to vector<4x1x64xf32>
    %45 = vector.broadcast %44 : vector<4x1x64xf32> to vector<4x8x64xf32>
    %46 = arith.mulf %42, %45 : vector<4x8x64xf32>
    %47 = vector.shape_cast %46 : vector<4x8x64xf32> to vector<32x64xf32>
    %48 = tpu.concatenate %27, %47 in 1 : vector<32x64xf32>, vector<32x64xf32> -> vector<32x128xf32>
    %c0_14 = arith.constant 0 : index
    %c0_15 = arith.constant 0 : index
    %c0_16 = arith.constant 0 : index
    %49 = vector.load %arg4[%c0_14, %c0_15, %c0_16] : memref<1x32x128xf32, #tpu.memory_space<vmem>>, vector<1x32x128xf32>
    %50 = vector.shape_cast %49 : vector<1x32x128xf32> to vector<32x128xf32>
    %51 = vector.shape_cast %48 : vector<32x128xf32> to vector<1x32x128xf32>
    tpu.vector_store %arg4[%c0_14, %c0_15, %c0_16], %51 {strides = array<i32>} : memref<1x32x128xf32, #tpu.memory_space<vmem>>, vector<1x32x128xf32>,
    return
  }
  func.func @transform_0(%arg0: i32) -> (i32, i32, i32) {
    %c0_i32 = arith.constant 0 : i32
    %c0_i32_0 = arith.constant 0 : i32
    %c0_i32_1 = arith.constant 0 : i32
    return %arg0, %c0_i32, %c0_i32_0 : i32, i32, i32
  }
  func.func @transform_1(%arg0: i32) -> (i32, i32) {
    %c0_i32 = arith.constant 0 : i32
    %c0_i32_0 = arith.constant 0 : i32
    %c0_i32_1 = arith.constant 0 : i32
    return %c0_i32, %c0_i32_0 : i32, i32
  }
  func.func @transform_2(%arg0: i32) -> (i32, i32) {
    %c0_i32 = arith.constant 0 : i32
    %c0_i32_0 = arith.constant 0 : i32
    %c0_i32_1 = arith.constant 0 : i32
    return %c0_i32, %c0_i32_0 : i32, i32
  }
  func.func @transform_3(%arg0: i32) -> (i32, i32, i32) {
    %c0_i32 = arith.constant 0 : i32
    %c0_i32_0 = arith.constant 0 : i32
    %c0_i32_1 = arith.constant 0 : i32
    return %arg0, %c0_i32, %c0_i32_0 : i32, i32, i32
  }
}

</mosaic_0001>

<bundles_post_ra>
// kernel: mhsa_pallas.1
= control target key start
LH: loop header
LB: loop body
LE: loop exit
PB: predicated region body
PF: predicated region fallthrough
CT: control target
= control target key end

     0   :  { %v3322_v1 = vmov 0   ;;  %vm145_vm0 = vcmask 261120   ;;  %vm314_vm1 = vcmask 1043456   ;;  %s3323_s19 = smov 64   ;;  %vm301_vm2 = vcmask 64512   ;;  %s4562_s0 = inlined_call_operand.vmem [shape: bf16[1,32,128], index: 0, kind: input, shape index: {}]   ;;  %s4563_s1 = inlined_call_operand.vmem [shape: bf16[96,32], index: 1, kind: input, shape index: {}]   ;;  %s4564_s2 = inlined_call_operand.vmem [shape: f32[96,1], index: 2, kind: input, shape index: {}]   ;;  %s4565_s3 = inlined_call_operand.vmem [shape: f32[1,32,128], index: 3, kind: output, shape index: {}]  }
   0x1   :  { %v3058_v0 = vld [vmem:[%s4562_s0] sm:$0xff]   ;;  %3056 = vset.pattern.permute.xlu0 %v3322_v1  ;;  %3057 = vset.pattern.permute.xlu1 %v3322_v1  ;;  %v3059_v2 = vld [vmem:[%s4562_s0 + $0x8] sm:$0xff]   ;;  %v3062_v7 = vld [vmem:[%s4563_s1 + $0x10] sm:$0xff]   ;;  %vm671_vm3 = vcmask 523264   ;;  %vm3325_vm4 = vmmov 0   ;;  %vm1271_vm5 = vcmask 130112  }
   0x2   :  { %2852 = vmatprep.subr.bf16.mxu0 %v3058_v0  ;;  %v3060_v3 = vld [vmem:[%s4563_s1] sm:$0xff]   ;;  %v3061_v4 = vld [vmem:[%s4563_s1 + $0x8] sm:$0xff]   ;;  %v33_v9 = vld [vmem:[%s4564_s2 + $0x10] sm:$0xff]  ;;  %vm1278_vm6 = vcmask 195712   ;;  %vm1285_vm7 = vcmask 261312   ;;  %vm1292_vm8 = vcmask 326912  }
   0x3   :  { %2853 = vmatpush3.bf16.msra.mxu0 %v3058_v0  ;;  %2856 = vmatprep.mubr.msk.bf16.mxu0 %vm145_vm0, %v3060_v3  ;;  %v31_v5 = vld [vmem:[%s4564_s2] sm:$0xff]  ;;  %v32_v8 = vld [vmem:[%s4564_s2 + $0x8] sm:$0xff]  ;;  %v34_v10 = vld [vmem:[%s4564_s2 + $0x18] sm:$0xff]  ;;  %vm1299_vm9 = vcmask 392512   ;;  %vm1306_vm10 = vcmask 458112   ;;  %vm1313_vm11 = vcmask 523712  }
   0x4   :  { %2854 = vmatprep.subr.bf16.mxu0 %v3059_v2  ;;  %v35_v6 = vld [vmem:[%s4564_s2 + $0x20] sm:$0xff]  ;;  %45 = vperm.xlu0 %3056, %v31_v5   ;;  %v36_v11 = vld [vmem:[%s4564_s2 + $0x28] sm:$0xff]  ;;  %v3063_v12 = vld [vmem:[%s4563_s1 + $0x18] sm:$0xff]  }
   0x5   :  { %65 = vperm.xlu1 %3057, %v35_v6   ;;  %v3064_v13 = vld [vmem:[%s4563_s1 + $0x20] sm:$0xff]   ;;  %v37_v14 = vld [vmem:[%s4564_s2 + $0x30] sm:$0xff]  ;;  %v38_v15 = vld [vmem:[%s4564_s2 + $0x38] sm:$0xff] }
   0x6   :  { %v3065_v16 = vld [vmem:[%s4563_s1 + $0x28] sm:$0xff]   ;;  %v41_v51 = vld [vmem:[%s4564_s2 + $0x50] sm:$0xff]  ;;  %v39_v54 = vld [vmem:[%s4564_s2 + $0x40] sm:$0xff] }
   0x7   :  { %2855 = vmatpush3.bf16.msra.mxu0 %v3059_v2  ;;  %v40_v49 = vld [vmem:[%s4564_s2 + $0x48] sm:$0xff]  ;;  %v42_v55 = vld [vmem:[%s4564_s2 + $0x58] sm:$0xff] }
   0x8   :  { %50 = vperm.xlu0 %3056, %v32_v8  }
   0x9   :  { %55 = vperm.xlu1 %3057, %v33_v9  }
   0xa   :  { %2857 = vmatmul.mubr.msk.bf16.vlgmr.msra.gmra.mrb[0].mxu0 %vm145_vm0, %v3061_v4 }
   0xb   :  { %2860 = vmatprep.mubr.msk.bf16.mxu0 %vm145_vm0, %v3062_v7 }
   0xc   :  { %60 = vperm.xlu0 %3056, %v34_v10  }
   0xd   :  { %70 = vperm.xlu1 %3057, %v36_v11  }
  0x11   :  { %75 = vperm.xlu1 %3057, %v37_v14  }
  0x12   :  { %2861 = vmatmul.mubr.msk.bf16.gmra.mrb[4].mxu0 %vm145_vm0, %v3063_v12 }
  0x13   :  { %2864 = vmatprep.mubr.msk.bf16.mxu0 %vm145_vm0, %v3064_v13 }
  0x15   :  { %80 = vperm.xlu1 %3057, %v38_v15  }
  0x1a   :  { %2865 = vmatmul.mubr.msk.bf16.gmra.mrb[8].mxu0 %vm145_vm0, %v3065_v16 }
  0x83   :  { %v46_v19 = vpop.permute.xlu0 %45 }
  0x84   :  { %v66_v17 = vpop.permute.xlu1 %65 }
  0x87   :  { %v51_v25 = vpop.permute.xlu0 %50 }
  0x88   :  { %v56_v18 = vpop.permute.xlu1 %55 }
  0x8b   :  { %v61_v50 = vpop.permute.xlu0 %60 }
  0x8c   :  { %v71_v24 = vpop.permute.xlu1 %70 }
  0x90   :  { %v76_v30 = vpop.permute.xlu1 %75 }
  0x94   :  { %v81_v56 = vpop.permute.xlu1 %80 }
  0xdd   :  { %v2858_v20 = vpop.f32.mrb[0].mxu0 }
  0xde   :  { %v198_v21 = vpop.f32.mrb[1].mxu0  ;;  %v207_v40 = vadd.f32 %v2858_v20, %v56_v18 }
  0xdf   :  { %v199_v22 = vadd.f32 %v198_v21, %v46_v19  ;;  %v2859_v23 = vpop.f32.mrb[2].mxu0 }
  0xe0   :  { %v201_v26 = vpop.f32.mrb[3].mxu0  ;;  %v3418_v45 = vpack.c.bf16 %v207_v40, %v207_v40  ;;  %v210_v52 = vadd.f32 %v2859_v23, %v61_v50 }
  0xe1   :  { %v2752_v27 = vpack.c.bf16 %v199_v22, %v199_v22  ;;  %v202_v28 = vadd.f32 %v201_v26, %v51_v25 }
  0xe2   :  { %v3433_v53 = vpack.c.bf16 %v210_v52, %v210_v52 }
  0xe3   :  { %v2753_v29 = vpack.c.bf16 %v202_v28, %v202_v28  ;;  %285 = vxpose.xlu0.c.b16.start.end [1/1] (short) (narrow) %v2752_v27, 64 }
  0xe5   :  { %383 = vxpose.xlu1.c.b16.start.end [1/1] (short) (narrow) %v2753_v29, 64  ;;  %v2862_v31 = vpop.f32.mrb[4].mxu0 }
  0xe6   :  { %v223_v32 = vadd.f32 %v2862_v31, %v76_v30  ;;  %v214_v33 = vpop.f32.mrb[5].mxu0 }
  0xe7   :  { %v215_v34 = vadd.f32 %v214_v33, %v66_v17  ;;  %v2863_v35 = vpop.f32.mrb[6].mxu0 }
  0xe8   :  { %v3400_v36 = vpack.c.bf16 %v223_v32, %v223_v32  ;;  %v217_v37 = vpop.f32.mrb[7].mxu0  ;;  %v226_v58 = vadd.f32 %v2863_v35, %v81_v56 }
  0xe9   :  { %v3402_v38 = vpack.c.bf16 %v215_v34, %v215_v34  ;;  %v218_v39 = vadd.f32 %v217_v37, %v71_v24 }
  0xea   :  { %3046 = vmatprep.subr.msk.bf16.mxu0 %vm314_vm1, %v3400_v36  ;;  %v508_v41 = vsel %vm314_vm1, %v3400_v36, 0  ;;  %v3445_v60 = vpack.c.bf16 %v226_v58, %v226_v58 }
  0xeb   :  { %v3408_v42 = vpack.c.bf16 %v218_v39, %v218_v39  ;;  %3044 = vmatprep.subr.msk.bf16.mxu1 %vm314_vm1, %v3402_v38  ;;  %v316_v43 = vsel %vm314_vm1, %v3402_v38, 0  ;;  %2889 = vmatpush3.bf16.msra.mxu0 %v508_v41 }
  0xec   :  { %2869 = vmatpush3.bf16.msra.mxu1 %v316_v43  ;;  %v604_v4 = vsel %vm314_vm1, %v3445_v60, 0 }
  0xed   :  { %3045 = vmatprep.subr.msk.bf16.mxu1 %vm314_vm1, %v3408_v42  ;;  %v3416_v44 = vpop.f32.mrb[8].mxu0  ;;  %v412_v61 = vsel %vm314_vm1, %v3408_v42, 0 }
  0xee   :  { %v3420_v46 = vpop.f32.mrb[9].mxu0 }
  0xef   :  { %v3422_v47 = vpop.f32.mrb[10].mxu0 }
  0xf0   :  { %479 = vxpose.xlu0.c.b16.start.end [1/1] (short) (narrow) %v3418_v45, 64  ;;  %v3425_v48 = vpop.f32.mrb[11].mxu0 }
  0xf5   :  { %90 = vperm.xlu1 %3057, %v40_v49  }
  0xf9   :  { %95 = vperm.xlu1 %3057, %v41_v51  }
  0xfd   :  { %1571 = vrot.lane.b32.xlu1 %v2753_v29, %s3323_s19  ;;  %575 = vxpose.xlu0.c.b16.start.end [1/1] (short) (narrow) %v3433_v53, 64 }
 0x112   :  { %85 = vperm.xlu0 %3056, %v39_v54  }
 0x116   :  { %1470 = vrot.lane.b32.xlu0 %v2752_v27, %s3323_s19 }
 0x11a   :  { %100 = vperm.xlu0 %3056, %v42_v55  }
 0x149   :  { %v293_v57 = vpop.trf.xlu0 }
 0x14a   :  { %2870 = vmatprep.mubr.msk.bf16.mxu1 %vm301_vm2, %v293_v57 }
 0x14b   :  { %v391_v63 = vpop.trf.xlu1 }
 0x14d   :  { %v294_v59 = vpop.trf.xlu0 }
 0x14e   :  { %2871 = vmatmul.mubr.msk.bf16.vlgmr.msra.gmra.mrb[0].mxu1 %vm301_vm2, %v294_v59 }
 0x14f   :  { %2879 = vmatpush3.bf16.msra.mxu1 %v412_v61  ;;  %v392_v2 = vpop.trf.xlu1 }
 0x150   :  { %3047 = vmatprep.subr.msk.bf16.mxu1 %vm314_vm1, %v3445_v60 }
 0x151   :  { %v295_v62 = vpop.trf.xlu0 }
 0x152   :  { %2874 = vmatprep.mubr.msk.bf16.mxu1 %vm301_vm2, %v295_v62 }
 0x153   :  { %v393_v5 = vpop.trf.xlu1 }
 0x155   :  { %v296_v0 = vpop.trf.xlu0 }
 0x156   :  { %2875 = vmatmul.mubr.msk.bf16.gmra.mrb[4].mxu1 %vm301_vm2, %v296_v0 }
 0x157   :  { %2880 = vmatprep.mubr.msk.bf16.mxu1 %vm301_vm2, %v391_v63  ;;  %v394_v8 = vpop.trf.xlu1 }
 0x159   :  { %v487_v1 = vpop.trf.xlu0 }
 0x15a   :  { %2890 = vmatprep.mubr.msk.bf16.mxu0 %vm301_vm2, %v487_v1 }
 0x15d   :  { %v488_v3 = vpop.trf.xlu0 }
 0x15e   :  { %2881 = vmatmul.mubr.msk.bf16.vlgmr.msra.gmra.mrb[8].mxu1 %vm301_vm2, %v392_v2  ;;  %2891 = vmatmul.mubr.msk.bf16.vlgmr.msra.gmra.mrb[12].mxu0 %vm301_vm2, %v488_v3 }
 0x15f   :  { %2899 = vmatpush3.bf16.msra.mxu1 %v604_v4  ;;  %2884 = vmatprep.mubr.msk.bf16.mxu1 %vm301_vm2, %v393_v5 }
 0x161   :  { %v489_v6 = vpop.trf.xlu0 }
 0x162   :  { %2894 = vmatprep.mubr.msk.bf16.mxu0 %vm301_vm2, %v489_v6 }
 0x165   :  { %v490_v7 = vpop.trf.xlu0 }
 0x166   :  { %2895 = vmatmul.mubr.msk.bf16.gmra.mrb[16].mxu0 %vm301_vm2, %v490_v7  ;;  %2885 = vmatmul.mubr.msk.bf16.gmra.mrb[12].mxu1 %vm301_vm2, %v394_v8 }
 0x169   :  { %v583_v9 = vpop.trf.xlu0 }
 0x16a   :  { %2900 = vmatprep.mubr.msk.bf16.mxu1 %vm301_vm2, %v583_v9 }
 0x16d   :  { %v584_v10 = vpop.trf.xlu0 }
 0x16e   :  { %2901 = vmatmul.mubr.msk.bf16.vlgmr.msra.gmra.mrb[16].mxu1 %vm301_vm2, %v584_v10 }
 0x171   :  { %v585_v11 = vpop.trf.xlu0 }
 0x172   :  { %2904 = vmatprep.mubr.msk.bf16.mxu1 %vm301_vm2, %v585_v11 }
 0x175   :  { %v586_v12 = vpop.trf.xlu0 }
 0x176   :  { %2905 = vmatmul.mubr.msk.bf16.gmra.mrb[20].mxu1 %vm301_vm2, %v586_v12 }
 0x221   :  { %v3468_v13 = vpop.f32.mrb[0].mxu1 }
 0x222   :  { %v3470_v14 = vpop.f32.mrb[1].mxu1  ;;  %v678_v15 = vsel %vm671_vm3, %v3468_v13, -inf }
 0x223   :  { %679 = vmax.xlane.f32.xlu1 %v678_v15  ;;  %v3474_v16 = vpop.f32.mrb[2].mxu1  ;;  %v672_v18 = vsel %vm671_vm3, %v3470_v14, -inf }
 0x224   :  { %v3476_v17 = vpop.f32.mrb[3].mxu1  ;;  %v681_v34 = vsel %vm671_vm3, %v3474_v16, -inf }
 0x225   :  { %v675_v39 = vsel %vm671_vm3, %v3476_v17, -inf }
 0x227   :  { %673 = vmax.xlane.f32.xlu1 %v672_v18  ;;  %v4566_v18 = vmov 0.0  }
 0x228   :  { %2908 = vmatprep.subr.bf16.mxu0 %v4566_v18  ;;  %2920 = vmatprep.subr.bf16.mxu1 %v4566_v18 }
 0x229   :  { %v3480_v19 = vpop.f32.mrb[4].mxu1  ;;  %2916 = vmatprep.mubr.msk.bf16.mxu0 %vm3325_vm4, %v4566_v18  ;;  %2928 = vmatprep.mubr.msk.bf16.mxu1 %vm3325_vm4, %v4566_v18 }
 0x22a   :  { %v3482_v20 = vpop.f32.mrb[5].mxu1  ;;  %v690_v54 = vsel %vm671_vm3, %v3480_v19, -inf }
 0x22b   :  { %v3484_v21 = vpop.f32.mrb[6].mxu1  ;;  %v684_v63 = vsel %vm671_vm3, %v3482_v20, -inf }
 0x22c   :  { %v3486_v22 = vpop.f32.mrb[7].mxu1  ;;  %v693_v61 = vsel %vm671_vm3, %v3484_v21, -inf }
 0x22d   :  { %v687_v5 = vsel %vm671_vm3, %v3486_v22, -inf }
 0x231   :  { %v3488_v23 = vpop.f32.mrb[12].mxu0  ;;  %v3490_v24 = vpop.f32.mrb[8].mxu1 }
 0x232   :  { %v3492_v25 = vpop.f32.mrb[13].mxu0  ;;  %v726_v26 = vsel %vm671_vm3, %v3488_v23, -inf  ;;  %v3496_v27 = vpop.f32.mrb[9].mxu1  ;;  %v702_v6 = vsel %vm671_vm3, %v3490_v24, -inf }
 0x233   :  { %727 = vmax.xlane.f32.xlu0 %v726_v26  ;;  %v3498_v28 = vpop.f32.mrb[14].mxu0  ;;  %v3500_v29 = vpop.f32.mrb[10].mxu1  ;;  %v720_v33 = vsel %vm671_vm3, %v3492_v25, -inf  ;;  %v696_v8 = vsel %vm671_vm3, %v3496_v27, -inf }
 0x234   :  { %v3502_v30 = vpop.f32.mrb[15].mxu0  ;;  %v729_v31 = vsel %vm671_vm3, %v3498_v28, -inf  ;;  %v3506_v32 = vpop.f32.mrb[11].mxu1  ;;  %v705_v10 = vsel %vm671_vm3, %v3500_v29, -inf }
 0x235   :  { %730 = vmax.xlane.f32.xlu1 %v729_v31  ;;  %v723_v50 = vsel %vm671_vm3, %v3502_v30, -inf  ;;  %v699_v12 = vsel %vm671_vm3, %v3506_v32, -inf }
 0x237   :  { %721 = vmax.xlane.f32.xlu0 %v720_v33 }
 0x239   :  { %682 = vmax.xlane.f32.xlu1 %v681_v34  ;;  %v3512_v35 = vpop.f32.mrb[16].mxu0  ;;  %v3514_v37 = vpop.f32.mrb[12].mxu1 }
 0x23a   :  { %v3518_v40 = vpop.f32.mrb[17].mxu0  ;;  %v3520_v41 = vpop.f32.mrb[13].mxu1  ;;  %v738_v55 = vsel %vm671_vm3, %v3512_v35, -inf  ;;  %v714_v9 = vsel %vm671_vm3, %v3514_v37, -inf }
 0x23b   :  { %676 = vmax.xlane.f32.xlu0 %v675_v39  ;;  %v3522_v43 = vpop.f32.mrb[18].mxu0  ;;  %v3524_v49 = vpop.f32.mrb[14].mxu1  ;;  %v732_v57 = vsel %vm671_vm3, %v3518_v40, -inf  ;;  %v708_v11 = vsel %vm671_vm3, %v3520_v41, -inf }
 0x23c   :  { %v3528_v51 = vpop.f32.mrb[19].mxu0  ;;  %v3530_v52 = vpop.f32.mrb[15].mxu1  ;;  %v741_v2 = vsel %vm671_vm3, %v3522_v43, -inf  ;;  %v717_v31 = vsel %vm671_vm3, %v3524_v49, -inf }
 0x23d   :  { %724 = vmax.xlane.f32.xlu1 %v723_v50  ;;  %v735_v0 = vsel %vm671_vm3, %v3528_v51, -inf  ;;  %v711_v33 = vsel %vm671_vm3, %v3530_v52, -inf }
 0x23f   :  { %691 = vmax.xlane.f32.xlu0 %v690_v54 }
 0x241   :  { %739 = vmax.xlane.f32.xlu1 %v738_v55  ;;  %v3536_v56 = vpop.f32.mrb[16].mxu1  ;;  %v3606_v55 = vpop.permute.xlu1 %90 }
 0x242   :  { %v3540_v58 = vpop.f32.mrb[17].mxu1  ;;  %v750_v15 = vsel %vm671_vm3, %v3536_v56, -inf }
 0x243   :  { %733 = vmax.xlane.f32.xlu0 %v732_v57  ;;  %v3542_v59 = vpop.f32.mrb[18].mxu1  ;;  %v744_v26 = vsel %vm671_vm3, %v3540_v58, -inf }
 0x244   :  { %v3546_v62 = vpop.f32.mrb[19].mxu1 }
 0x245   :  { %694 = vmax.xlane.f32.xlu1 %v693_v61  ;;  %v747_v39 = vsel %vm671_vm3, %v3546_v62, -inf  ;;  %v3608_v57 = vpop.permute.xlu1 %95  ;;  %v3612_v61 = vpop.permute.xlu0 %85 }
 0x247   :  { %685 = vmax.xlane.f32.xlu0 %v684_v63 }
 0x249   :  { %736 = vmax.xlane.f32.xlu1 %v735_v0  ;;  %v3552_v1 = vpop.f32.mrb[20].mxu1  ;;  %v1572_v63 = vpop.permute.xlu1 %1571 }
 0x24a   :  { %v3556_v3 = vpop.f32.mrb[21].mxu1  ;;  %v1471_v0 = vpop.permute.xlu0 %1470 }
 0x24b   :  { %742 = vmax.xlane.f32.xlu0 %v741_v2  ;;  %v3558_v4 = vpop.f32.mrb[22].mxu1  ;;  %v756_v34 = vsel %vm671_vm3, %v3556_v3, -inf }
 0x24c   :  { %v3564_v7 = vpop.f32.mrb[23].mxu1  ;;  %v765_v50 = vsel %vm671_vm3, %v3558_v4, -inf }
 0x24d   :  { %688 = vmax.xlane.f32.xlu1 %v687_v5  ;;  %v759_v54 = vsel %vm671_vm3, %v3564_v7, -inf }
 0x24e   :  { %v3616_v5 = vpop.permute.xlu0 %100 }
 0x24f   :  { %703 = vmax.xlane.f32.xlu0 %v702_v6 }
 0x251   :  { %697 = vmax.xlane.f32.xlu1 %v696_v8 }
 0x253   :  { %715 = vmax.xlane.f32.xlu0 %v714_v9 }
 0x255   :  { %706 = vmax.xlane.f32.xlu1 %v705_v10 }
 0x257   :  { %709 = vmax.xlane.f32.xlu0 %v708_v11 }
 0x259   :  { %700 = vmax.xlane.f32.xlu1 %v699_v12 }
 0x25b   :  { %751 = vmax.xlane.f32.xlu0 %v750_v15 }
 0x25f   :  { %745 = vmax.xlane.f32.xlu0 %v744_v26 }
 0x26a   :  { %1672 = vrot.lane.b32.xlu1 %v3418_v45, %s3323_s19  ;;  %v762_v45 = vsel %vm671_vm3, %v3552_v1, -inf }
 0x275   :  { %1773 = vrot.lane.b32.xlu0 %v3433_v53, %s3323_s19  ;;  %v753_v53 = vsel %vm671_vm3, %v3542_v59, -inf }
 0x28e   :  { %718 = vmax.xlane.f32.xlu1 %v717_v31 }
 0x292   :  { %712 = vmax.xlane.f32.xlu1 %v711_v33 }
 0x294   :  { %763 = vmax.xlane.f32.xlu0 %v762_v45 }
 0x296   :  { %754 = vmax.xlane.f32.xlu1 %v753_v53 }
 0x298   :  { %757 = vmax.xlane.f32.xlu0 %v756_v34 }
 0x29a   :  { %748 = vmax.xlane.f32.xlu1 %v747_v39 }
 0x29e   :  { %766 = vmax.xlane.f32.xlu1 %v765_v50 }
 0x2a2   :  { %760 = vmax.xlane.f32.xlu1 %v759_v54 }
 0x2ae   :  { %1590 = vrot.lane.b32.xlu0 %v3408_v42, %s3323_s19 }
 0x2b0   :  { %v680_v2 = vpop.xlane.xlu1 %679 }
 0x2b1   :  { %v770_v10 = vsub.f32 %v3468_v13, %v680_v2 }
 0x2b3   :  { %1489 = vrot.lane.b32.xlu1 %v3402_v38, %s3323_s19  ;;  %v804_v38 = vmul.f32 1.442695, %v770_v10 }
 0x2b4   :  { %v674_v6 = vpop.xlane.xlu1 %673 }
 0x2b5   :  { %v768_v15 = vsub.f32 %v3470_v14, %v674_v6 }
 0x2b7   :  { %v800_v34 = vmul.f32 1.442695, %v768_v15 }
 0x2c0   :  { %v728_v8 = vpop.xlane.xlu0 %727 }
 0x2c1   :  { %v786_v9 = vsub.f32 %v3488_v23, %v728_v8 }
 0x2c2   :  { %v731_v11 = vpop.xlane.xlu1 %730 }
 0x2c3   :  { %v836_v12 = vmul.f32 1.442695, %v786_v9  ;;  %v787_v42 = vsub.f32 %v3498_v28, %v731_v11 }
 0x2c4   :  { %v722_v26 = vpop.xlane.xlu0 %721 }
 0x2c5   :  { %v838_v31 = vmul.f32 1.442695, %v787_v42  ;;  %3066 = vpow2.f32 %v836_v12  ;;  %v784_v33 = vsub.f32 %v3492_v25, %v722_v26 }
 0x2c6   :  { %v683_v45 = vpop.xlane.xlu1 %682 }
 0x2c7   :  { %3068 = vpow2.f32 %v838_v31  ;;  %v771_v53 = vsub.f32 %v3474_v16, %v683_v45  ;;  %v832_v50 = vmul.f32 1.442695, %v784_v33 }
 0x2c8   :  { %v677_v23 = vpop.xlane.xlu0 %676  ;;  %3070 = vpow2.f32 %v804_v38 }
 0x2c9   :  { %v806_v39 = vmul.f32 1.442695, %v771_v53  ;;  %v769_v13 = vsub.f32 %v3476_v17, %v677_v23 }
 0x2ca   :  { %v725_v28 = vpop.xlane.xlu1 %724 }
 0x2cb   :  { %3072 = vpow2.f32 %v806_v39  ;;  %v802_v14 = vmul.f32 1.442695, %v769_v13  ;;  %v785_v54 = vsub.f32 %v3502_v30, %v725_v28 }
 0x2cc   :  { %3074 = vpow2.f32 %v800_v34  ;;  %1574 = vxpose.xlu0.c.b16.start.end [1/1] (short) (narrow) %v1572_v63, 64  ;;  %v692_v2 = vpop.xlane.xlu0 %691 }
 0x2cd   :  { %3076 = vpow2.f32 %v802_v14  ;;  %v834_v25 = vmul.f32 1.442695, %v785_v54  ;;  %v774_v16 = vsub.f32 %v3480_v19, %v692_v2 }
 0x2ce   :  { %3078 = vpow2.f32 %v832_v50  ;;  %v740_v6 = vpop.xlane.xlu1 %739 }
 0x2cf   :  { %3080 = vpow2.f32 %v834_v25  ;;  %v3627_v8 = vpop.eup %3066  ;;  %v812_v10 = vmul.f32 1.442695, %v774_v16  ;;  %v790_v19 = vsub.f32 %v3512_v35, %v740_v6 }
 0x2d0   :  { %v734_v17 = vpop.xlane.xlu0 %733 }
 0x2d1   :  { %v3629_v9 = vpop.eup %3068  ;;  %v788_v11 = vsub.f32 %v3518_v40, %v734_v17  ;;  %3082 = vpow2.f32 %v812_v10  ;;  %v844_v23 = vmul.f32 1.442695, %v790_v19 }
 0x2d2   :  { %v695_v12 = vpop.xlane.xlu1 %694  ;;  %v969_v30 = vpack.c.bf16 %v3629_v9, %v3627_v8  ;;  %v3635_v42 = vpop.eup %3070 }
 0x2d3   :  { %v775_v63 = vsub.f32 %v3484_v21, %v695_v12  ;;  %v840_v33 = vmul.f32 1.442695, %v788_v11 }
 0x2d4   :  { %v686_v15 = vpop.xlane.xlu0 %685 }
 0x2d5   :  { %v3638_v26 = vpop.eup %3072  ;;  %v814_v31 = vmul.f32 1.442695, %v775_v63  ;;  %v772_v40 = vsub.f32 %v3482_v20, %v686_v15 }
 0x2d6   :  { %v3640_v38 = vpop.eup %3074  ;;  %v737_v45 = vpop.xlane.xlu1 %736  ;;  %1473 = vxpose.xlu1.c.b16.start.end [1/1] (short) (narrow) %v1471_v0, 64  ;;  %v961_v53 = vpack.c.bf16 %v3638_v26, %v3635_v42 }
 0x2d7   :  { %v3645_v21 = vpop.eup %3076  ;;  %3084 = vpow2.f32 %v814_v31  ;;  %v789_v35 = vsub.f32 %v3528_v51, %v737_v45  ;;  %v808_v28 = vmul.f32 1.442695, %v772_v40 }
 0x2d8   :  { %v3648_v34 = vpop.eup %3078  ;;  %v743_v39 = vpop.xlane.xlu0 %742  ;;  %v960_v13 = vpack.c.bf16 %v3645_v21, %v3640_v38  ;;  %3086 = vpow2.f32 %v840_v33  ;;  %v983_v19 = vsel %vm671_vm3, %v961_v53, 0 }
 0x2d9   :  { %v3652_v50 = vpop.eup %3080  ;;  %v842_v20 = vmul.f32 1.442695, %v789_v35  ;;  %v791_v0 = vsub.f32 %v3522_v43, %v743_v39 }
 0x2da   :  { %v689_v14 = vpop.xlane.xlu1 %688  ;;  %v980_v54 = vsel %vm671_vm3, %v960_v13, 0  ;;  %v968_v51 = vpack.c.bf16 %v3652_v50, %v3648_v34 }
 0x2db   :  { %3088 = vpow2.f32 %v842_v20  ;;  %v846_v2 = vmul.f32 1.442695, %v791_v0  ;;  %v773_v25 = vsub.f32 %v3486_v22, %v689_v14  ;;  %2909 = vmatpush3.bf16.xpose.msra.mxu0 %v980_v54  ;;  %v3661_v10 = vpop.eup %3082 }
 0x2dc   :  { %3090 = vpow2.f32 %v844_v23  ;;  %v704_v16 = vpop.xlane.xlu0 %703  ;;  %2910 = vmatprep.subr.bf16.mxu0 %v4566_v18  ;;  %4581 = vst [vmem:[#allocation2_spill] sm:$0xff] %v3661_v10 }
 0x2dd   :  { %3092 = vpow2.f32 %v846_v2  ;;  %v810_v6 = vmul.f32 1.442695, %v773_v25  ;;  %v778_v43 = vsub.f32 %v3490_v24, %v704_v16 }
 0x2de   :  { %3094 = vpow2.f32 %v808_v28  ;;  %v698_v17 = vpop.xlane.xlu1 %697 }
 0x2df   :  { %3096 = vpow2.f32 %v810_v6  ;;  %v820_v22 = vmul.f32 1.442695, %v778_v43  ;;  %v776_v12 = vsub.f32 %v3496_v27, %v698_v17  ;;  %v231_v17 = vadd.f32 %v3420_v46, %v3612_v61 }
 0x2e0   :  { %v716_v45 = vpop.xlane.xlu0 %715  ;;  %v1090_v46 = vsel %vm671_vm3, %v968_v51, 0 }
 0x2e1   :  { %v3663_v11 = vpop.eup %3084  ;;  %1691 = vrot.lane.b32.xlu0 %v3400_v36, %s3323_s19  ;;  %3098 = vpow2.f32 %v820_v22  ;;  %v816_v27 = vmul.f32 1.442695, %v776_v12 }
 0x2e2   :  { %4582 = vst [vmem:[#allocation3_spill] sm:$0xff] %v3663_v11  ;;  %v707_v63 = vpop.xlane.xlu1 %706  ;;  %v963_v15 = vpack.c.bf16 %v3663_v11, %v3661_v10  ;;  %v3672_v31 = vpop.eup %3086 }
 0x2e3   :  { %v779_v24 = vsub.f32 %v3500_v29, %v707_v63  ;;  %2911 = vmatpush3.bf16.xpose.msra.mxu0 %v983_v19  ;;  %v3713_v19 = vpack.c.bf16 %v231_v17, %v231_v17 }
 0x2e4   :  { %2912 = vmatprep.subr.bf16.mxu0 %v4566_v18  ;;  %v710_v28 = vpop.xlane.xlu0 %709  ;;  %v989_v6 = vsel %vm671_vm3, %v963_v15, 0 }
 0x2e5   :  { %v3675_v33 = vpop.eup %3088  ;;  %v822_v40 = vmul.f32 1.442695, %v779_v24  ;;  %v1093_v24 = vsel %vm671_vm3, %v969_v30, 0 }
 0x2e6   :  { %v3677_v36 = vpop.eup %3090  ;;  %v701_v35 = vpop.xlane.xlu1 %700  ;;  %1792 = vrot.lane.b32.xlu1 %v3445_v60, %s3323_s19  ;;  %v970_v29 = vpack.c.bf16 %v3675_v33, %v3672_v31 }
 0x2e7   :  { %4583 = vst [vmem:[#allocation4_spill] sm:$0xff] %v3677_v36  ;;  %v3683_v53 = vpop.eup %3092  ;;  %3100 = vpow2.f32 %v822_v40  ;;  %v777_v23 = vsub.f32 %v3506_v32, %v701_v35  ;;  %v239_v35 = vadd.f32 %v3416_v44, %v3608_v57 }
 0x2e8   :  { %4584 = vst [vmem:[#allocation5_spill] sm:$0xff] %v3683_v53  ;;  %v3686_v39 = vpop.eup %3094  ;;  %v971_v13 = vpack.c.bf16 %v3683_v53, %v3677_v36  ;;  %3102 = vpow2.f32 %v816_v27  ;;  %v752_v2 = vpop.xlane.xlu0 %751  ;;  %v1096_v40 = vsel %vm671_vm3, %v970_v29, 0 }
 0x2e9   :  { %v3690_v20 = vpop.eup %3096  ;;  %v818_v0 = vmul.f32 1.442695, %v777_v23  ;;  %v782_v23 = vsub.f32 %v3514_v37, %v716_v45 }
 0x2ea   :  { %v962_v60 = vpack.c.bf16 %v3690_v20, %v3686_v39  ;;  %v1673_v51 = vpop.permute.xlu1 %1672  ;;  %v1099_v27 = vsel %vm671_vm3, %v971_v13, 0 }
 0x2eb   :  { %3104 = vpow2.f32 %v818_v0  ;;  %v3696_v32 = vpop.eup %3098  ;;  %v3738_v0 = vpack.c.bf16 %v239_v35, %v239_v35  ;;  %v828_v30 = vmul.f32 1.442695, %v782_v23 }
 0x2ec   :  { %v986_v14 = vsel %vm671_vm3, %v962_v60, 0  ;;  %v746_v12 = vpop.xlane.xlu0 %745  ;;  %v780_v60 = vsub.f32 %v3520_v41, %v710_v28 }
 0x2ed   :  { %2913 = vmatpush3.bf16.xpose.msra.mxu0 %v986_v14  ;;  %3106 = vpow2.f32 %v828_v30  ;;  %v792_v41 = vsub.f32 %v3540_v58, %v746_v12 }
 0x2ee   :  { %2914 = vmatprep.subr.bf16.mxu0 %v4566_v18  ;;  %v824_v13 = vmul.f32 1.442695, %v780_v60 }
 0x2f0   :  { %v1774_v61 = vpop.permute.xlu0 %1773 }
 0x2f1   :  { %v3698_v54 = vpop.eup %3100 }
 0x2f2   :  { %v965_v25 = vpack.c.bf16 %v3698_v54, %v3696_v32  ;;  %v3702_v16 = vpop.eup %3102 }
 0x2f4   :  { %v1038_v15 = vsel %vm671_vm3, %v965_v25, 0 }
 0x2f5   :  { %v3705_v43 = vpop.eup %3104  ;;  %2915 = vmatpush3.bf16.xpose.msra.mxu0 %v989_v6  ;;  %v794_v6 = vsub.f32 %v3536_v56, %v752_v2 }
 0x2f6   :  { %v964_v22 = vpack.c.bf16 %v3705_v43, %v3702_v16  ;;  %2932 = vmatprep.subr.bf16.mxu0 %v4566_v18 }
 0x2f7   :  { %v852_v45 = vmul.f32 1.442695, %v794_v6 }
 0x2f8   :  { %v1035_v63 = vsel %vm671_vm3, %v964_v22, 0 }
 0x2f9   :  { %2921 = vmatpush3.bf16.xpose.msra.mxu1 %v1035_v63  ;;  %v848_v63 = vmul.f32 1.442695, %v792_v41 }
 0x2fa   :  { %2922 = vmatprep.subr.bf16.mxu1 %v4566_v18 }
 0x2fc   :  { %2917 = vmatmul.mubr.msk.bf16.vlgmr.msra.gmra.mrb[20].mxu0 %vm671_vm3, %v3713_v19 }
 0x2fd   :  { %2933 = vmatpush3.bf16.xpose.msra.mxu0 %v1090_v46  ;;  %2940 = vmatprep.mubr.msk.bf16.mxu0 %vm3325_vm4, %v4566_v18 }
 0x2fe   :  { %2934 = vmatprep.subr.bf16.mxu0 %v4566_v18 }
 0x2ff   :  { %1776 = vxpose.xlu0.c.b16.start.end [1/1] (short) (narrow) %v1774_v61, 64  ;;  %v3750_v61 = vpop.eup %3106 }
 0x300   :  { %4585 = vst [vmem:[#allocation6_spill] sm:$0xff] %v3750_v61 }
 0x301   :  { %2923 = vmatpush3.bf16.xpose.msra.mxu1 %v1038_v15 }
 0x302   :  { %2924 = vmatprep.subr.bf16.mxu1 %v4566_v18 }
 0x305   :  { %2935 = vmatpush3.bf16.xpose.msra.mxu0 %v1093_v24 }
 0x306   :  { %2936 = vmatprep.subr.bf16.mxu0 %v4566_v18 }
 0x309   :  { %1675 = vxpose.xlu1.c.b16.start.end [1/1] (short) (narrow) %v1673_v51, 64 }
 0x30d   :  { %2937 = vmatpush3.bf16.xpose.msra.mxu0 %v1096_v40 }
 0x30e   :  { %2938 = vmatprep.subr.bf16.mxu0 %v4566_v18 }
 0x315   :  { %2939 = vmatpush3.bf16.xpose.msra.mxu0 %v1099_v27 }
 0x31b   :  { %v719_v14 = vpop.xlane.xlu1 %718 }
 0x31c   :  { %v783_v25 = vsub.f32 %v3524_v49, %v719_v14  ;;  %2941 = vmatmul.mubr.msk.bf16.vlgmr.msra.gmra.mrb[24].mxu0 %vm671_vm3, %v3738_v0 }
 0x31e   :  { %v830_v29 = vmul.f32 1.442695, %v783_v25 }
 0x31f   :  { %v713_v17 = vpop.xlane.xlu1 %712 }
 0x320   :  { %3108 = vpow2.f32 %v830_v29  ;;  %v781_v44 = vsub.f32 %v3530_v52, %v713_v17 }
 0x321   :  { %v764_v57 = vpop.xlane.xlu0 %763  ;;  %3110 = vpow2.f32 %v824_v13 }
 0x322   :  { %v826_v37 = vmul.f32 1.442695, %v781_v44  ;;  %v798_v46 = vsub.f32 %v3552_v1, %v764_v57 }
 0x323   :  { %v755_v28 = vpop.xlane.xlu1 %754 }
 0x324   :  { %3112 = vpow2.f32 %v826_v37  ;;  %v795_v49 = vsub.f32 %v3542_v59, %v755_v28  ;;  %v860_v58 = vmul.f32 1.442695, %v798_v46  ;;  %v234_v28 = vadd.f32 %v3425_v48, %v3606_v55 }
 0x325   :  { %3114 = vpow2.f32 %v852_v45  ;;  %v758_v2 = vpop.xlane.xlu0 %757 }
 0x326   :  { %v854_v22 = vmul.f32 1.442695, %v795_v49  ;;  %v796_v12 = vsub.f32 %v3556_v3, %v758_v2  ;;  %v3796_v2 = vpack.c.bf16 %v234_v28, %v234_v28 }
 0x327   :  { %v749_v56 = vpop.xlane.xlu1 %748 }
 0x328   :  { %3116 = vpow2.f32 %v854_v22  ;;  %v793_v52 = vsub.f32 %v3546_v62, %v749_v56  ;;  %v856_v35 = vmul.f32 1.442695, %v796_v12 }
 0x329   :  { %3118 = vpow2.f32 %v848_v63  ;;  %v1591_v44 = vpop.permute.xlu0 %1590 }
 0x32a   :  { %v3752_v15 = vpop.eup %3108  ;;  %v850_v24 = vmul.f32 1.442695, %v793_v52 }
 0x32b   :  { %4586 = vst [vmem:[#allocation7_spill] sm:$0xff] %v3752_v15  ;;  %v767_v59 = vpop.xlane.xlu1 %766  ;;  %v967_v51 = vpack.c.bf16 %v3752_v15, %v3750_v61  ;;  %v3758_v40 = vpop.eup %3110 }
 0x32c   :  { %3120 = vpow2.f32 %v850_v24  ;;  %v799_v1 = vsub.f32 %v3558_v4, %v767_v59  ;;  %4587 = vst [vmem:[#allocation8_spill] sm:$0xff] %v3758_v40 }
 0x32d   :  { %3122 = vpow2.f32 %v860_v58  ;;  %v1044_v45 = vsel %vm671_vm3, %v967_v51, 0 }
 0x32e   :  { %v3760_v27 = vpop.eup %3112  ;;  %v862_v62 = vmul.f32 1.442695, %v799_v1 }
 0x32f   :  { %4588 = vst [vmem:[#allocation9_spill] sm:$0xff] %v3760_v27  ;;  %v761_v23 = vpop.xlane.xlu1 %760  ;;  %v966_v30 = vpack.c.bf16 %v3760_v27, %v3758_v40  ;;  %v3765_v60 = vpop.eup %3114 }
 0x330   :  { %3124 = vpow2.f32 %v862_v62  ;;  %v797_v3 = vsub.f32 %v3564_v7, %v761_v23 }
 0x331   :  { %v1041_v14 = vsel %vm671_vm3, %v966_v30, 0  ;;  %3126 = vpow2.f32 %v856_v35 }
 0x332   :  { %v3768_v25 = vpop.eup %3116  ;;  %v858_v4 = vmul.f32 1.442695, %v797_v3  ;;  %2925 = vmatpush3.bf16.xpose.msra.mxu1 %v1041_v14  ;;  %v1582_v49 = vpop.trf.xlu0  ;;  %v242_v3 = vadd.f32 %v3422_v47, %v3616_v5 }
 0x333   :  { %4589 = vst [vmem:[#allocation10_spill] sm:$0xff] %v3768_v25  ;;  %v1490_v29 = vpop.permute.xlu1 %1489  ;;  %2926 = vmatprep.subr.bf16.mxu1 %v4566_v18  ;;  %v973_v13 = vpack.c.bf16 %v3768_v25, %v3765_v60  ;;  %v3775_v6 = vpop.eup %3118 }
 0x334   :  { %3128 = vpow2.f32 %v858_v4  ;;  %3048 = vmatprep.subr.msk.bf16.mxu0 %vm314_vm1, %v1490_v29  ;;  %v1504_v7 = vsel %vm314_vm1, %v1490_v29, 0  ;;  %v3820_v14 = vpack.c.bf16 %v242_v3, %v242_v3  ;;  %v1605_v4 = vsel %vm314_vm1, %v1591_v44, 0 }
 0x335   :  { %2957 = vmatpush3.bf16.msra.mxu0 %v1504_v7  ;;  %v1148_v51 = vsel %vm671_vm3, %v973_v13, 0 }
 0x336   :  { %v3777_v17 = vpop.eup %3120  ;;  %v1583_v55 = vpop.trf.xlu0 }
 0x337   :  { %v972_v37 = vpack.c.bf16 %v3777_v17, %v3775_v6  ;;  %v3781_v57 = vpop.eup %3122 }
 0x338   :  { %4590 = vst [vmem:[#allocation11_spill] sm:$0xff] %v3781_v57 }
 0x339   :  { %v1145_v48 = vsel %vm671_vm3, %v972_v37, 0 }
 0x33a   :  { %v3784_v41 = vpop.eup %3124  ;;  %2927 = vmatpush3.bf16.xpose.msra.mxu1 %v1044_v45  ;;  %v1584_v12 = vpop.trf.xlu0 }
 0x33b   :  { %4591 = vst [vmem:[#allocation12_spill] sm:$0xff] %v3784_v41  ;;  %2944 = vmatprep.subr.bf16.mxu1 %v4566_v18  ;;  %v975_v22 = vpack.c.bf16 %v3784_v41, %v3781_v57  ;;  %v3791_v46 = vpop.eup %3126 }
 0x33c   :  { %v1481_v63 = vpop.trf.xlu1  ;;  %4592 = vst [vmem:[#allocation13_spill] sm:$0xff] %v3791_v46 }
 0x33d   :  { %2958 = vmatprep.mubr.msk.bf16.mxu0 %vm301_vm2, %v1481_v63  ;;  %v1154_v30 = vsel %vm671_vm3, %v975_v22, 0 }
 0x33e   :  { %v3794_v56 = vpop.eup %3128  ;;  %v1585_v1 = vpop.trf.xlu0 }
 0x33f   :  { %4593 = vst [vmem:[#allocation14_spill] sm:$0xff] %v3794_v56  ;;  %v974_v52 = vpack.c.bf16 %v3794_v56, %v3791_v46 }
 0x340   :  { %v1482_v24 = vpop.trf.xlu1 }
 0x341   :  { %2929 = vmatmul.mubr.msk.bf16.vlgmr.msra.gmra.mrb[24].mxu1 %vm671_vm3, %v3796_v2  ;;  %2959 = vmatmul.mubr.msk.bf16.vlgmr.msra.gmra.mrb[28].mxu0 %vm301_vm2, %v1482_v24  ;;  %v1151_v62 = vsel %vm671_vm3, %v974_v52, 0 }
 0x342   :  { %2945 = vmatpush3.bf16.xpose.msra.mxu1 %v1145_v48  ;;  %2952 = vmatprep.mubr.msk.bf16.mxu1 %vm3325_vm4, %v4566_v18 }
 0x343   :  { %2946 = vmatprep.subr.bf16.mxu1 %v4566_v18 }
 0x344   :  { %v1483_v58 = vpop.trf.xlu1 }
 0x345   :  { %2962 = vmatprep.mubr.msk.bf16.mxu0 %vm301_vm2, %v1483_v58 }
 0x348   :  { %v1484_v59 = vpop.trf.xlu1 }
 0x349   :  { %2963 = vmatmul.mubr.msk.bf16.gmra.mrb[32].mxu0 %vm301_vm2, %v1484_v59 }
 0x34a   :  { %2947 = vmatpush3.bf16.xpose.msra.mxu1 %v1148_v51 }
 0x34b   :  { %2948 = vmatprep.subr.bf16.mxu1 %v4566_v18 }
 0x352   :  { %2949 = vmatpush3.bf16.xpose.msra.mxu1 %v1151_v62 }
 0x353   :  { %v1692_v35 = vpop.permute.xlu0 %1691  ;;  %2950 = vmatprep.subr.bf16.mxu1 %v4566_v18 }
 0x354   :  { %3050 = vmatprep.subr.msk.bf16.mxu0 %vm314_vm1, %v1692_v35  ;;  %v1706_v23 = vsel %vm314_vm1, %v1692_v35, 0 }
 0x355   :  { %2977 = vmatpush3.bf16.msra.mxu0 %v1706_v23 }
 0x356   :  { %2996 = vmatprep.subr.bf16.mxu0 %v4566_v18 }
 0x358   :  { %v1793_v29 = vpop.permute.xlu1 %1792 }
 0x359   :  { %v1807_v13 = vsel %vm314_vm1, %v1793_v29, 0 }
 0x35a   :  { %2951 = vmatpush3.bf16.xpose.msra.mxu1 %v1154_v30 }
 0x35b   :  { %3049 = vmatprep.subr.msk.bf16.mxu1 %vm314_vm1, %v1591_v44 }
 0x361   :  { %2953 = vmatmul.mubr.msk.bf16.vlgmr.msra.gmra.mrb[28].mxu1 %vm671_vm3, %v3820_v14 }
 0x362   :  { %2967 = vmatpush3.bf16.msra.mxu1 %v1605_v4  ;;  %2968 = vmatprep.mubr.msk.bf16.mxu1 %vm301_vm2, %v1582_v49 }
 0x363   :  { %3051 = vmatprep.subr.msk.bf16.mxu1 %vm314_vm1, %v1793_v29 }
 0x365   :  { %v1784_v47 = vpop.trf.xlu0 }
 0x369   :  { %2969 = vmatmul.mubr.msk.bf16.vlgmr.msra.gmra.mrb[32].mxu1 %vm301_vm2, %v1583_v55  ;;  %v1785_v7 = vpop.trf.xlu0 }
 0x36a   :  { %2987 = vmatpush3.bf16.msra.mxu1 %v1807_v13  ;;  %2972 = vmatprep.mubr.msk.bf16.mxu1 %vm301_vm2, %v1584_v12 }
 0x36b   :  { %3008 = vmatprep.subr.bf16.mxu1 %v4566_v18 }
 0x36d   :  { %v1786_v45 = vpop.trf.xlu0 }
 0x36f   :  { %v1683_v5 = vpop.trf.xlu1 }
 0x370   :  { %2978 = vmatprep.mubr.msk.bf16.mxu0 %vm301_vm2, %v1683_v5 }
 0x371   :  { %2973 = vmatmul.mubr.msk.bf16.gmra.mrb[36].mxu1 %vm301_vm2, %v1585_v1  ;;  %v1787_v49 = vpop.trf.xlu0 }
 0x372   :  { %2988 = vmatprep.mubr.msk.bf16.mxu1 %vm301_vm2, %v1784_v47 }
 0x373   :  { %v1684_v44 = vpop.trf.xlu1 }
 0x374   :  { %2979 = vmatmul.mubr.msk.bf16.vlgmr.msra.gmra.mrb[36].mxu0 %vm301_vm2, %v1684_v44 }
 0x377   :  { %v1685_v37 = vpop.trf.xlu1 }
 0x378   :  { %2982 = vmatprep.mubr.msk.bf16.mxu0 %vm301_vm2, %v1685_v37 }
 0x379   :  { %2989 = vmatmul.mubr.msk.bf16.vlgmr.msra.gmra.mrb[40].mxu1 %vm301_vm2, %v1785_v7 }
 0x37a   :  { %2992 = vmatprep.mubr.msk.bf16.mxu1 %vm301_vm2, %v1786_v45 }
 0x37b   :  { %v1686_v28 = vpop.trf.xlu1 }
 0x37c   :  { %2983 = vmatmul.mubr.msk.bf16.gmra.mrb[40].mxu0 %vm301_vm2, %v1686_v28 }
 0x37d   :  { %3004 = vmatprep.mubr.msk.bf16.mxu0 %vm3325_vm4, %v4566_v18 }
 0x381   :  { %2993 = vmatmul.mubr.msk.bf16.gmra.mrb[44].mxu1 %vm301_vm2, %v1787_v49 }
 0x382   :  { %3016 = vmatprep.mubr.msk.bf16.mxu1 %vm3325_vm4, %v4566_v18 }
 0x3cf   :  { %v3844_v22 = vpop.f32.mrb[20].mxu0 }
 0x3d0   :  { %4594 = vst [vmem:[#allocation15_spill] sm:$0xff] %v3844_v22  ;;  %v2918_v63 = vpop.f32.mrb[21].mxu0 }
 0x3d1   :  { %v1028_v52 = vpop.f32.mrb[22].mxu0 }
 0x3d2   :  { %v2919_v24 = vpop.f32.mrb[23].mxu0 }
 0x3ef   :  { %v3846_v48 = vpop.f32.mrb[24].mxu0 }
 0x3f0   :  { %4595 = vst [vmem:[#allocation16_spill] sm:$0xff] %v3846_v48  ;;  %v2942_v55 = vpop.f32.mrb[25].mxu0 }
 0x3f1   :  { %v1138_v58 = vpop.f32.mrb[26].mxu0 }
 0x3f2   :  { %v2943_v12 = vpop.f32.mrb[27].mxu0 }
 0x414   :  { %v3848_v59 = vpop.f32.mrb[24].mxu1  ;;  %v3850_v51 = vpop.f32.mrb[28].mxu0 }
 0x415   :  { %4596 = vst [vmem:[#allocation17_spill] sm:$0xff] %v3848_v59  ;;  %v2930_v1 = vpop.f32.mrb[25].mxu1  ;;  %v3852_v62 = vpop.f32.mrb[29].mxu0  ;;  %v1880_v35 = vsel %vm671_vm3, %v3850_v51, -inf }
 0x416   :  { %v1083_v23 = vpop.f32.mrb[26].mxu1  ;;  %v3856_v30 = vpop.f32.mrb[30].mxu0  ;;  %1881 = vmax.xlane.f32.xlu0 %v1880_v35  ;;  %v1874_v13 = vsel %vm671_vm3, %v3852_v62, -inf }
 0x417   :  { %v2931_v3 = vpop.f32.mrb[27].mxu1  ;;  %v1883_v4 = vsel %vm671_vm3, %v3856_v30, -inf  ;;  %v3860_v29 = vpop.f32.mrb[31].mxu0 }
 0x418   :  { %1884 = vmax.xlane.f32.xlu1 %v1883_v4  ;;  %v1877_v47 = vsel %vm671_vm3, %v3860_v29, -inf }
 0x41a   :  { %1875 = vmax.xlane.f32.xlu0 %v1874_v13 }
 0x41c   :  { %1878 = vmax.xlane.f32.xlu1 %v1877_v47  ;;  %v3866_v5 = vpop.f32.mrb[32].mxu0 }
 0x41d   :  { %v3868_v7 = vpop.f32.mrb[33].mxu0  ;;  %v1892_v44 = vsel %vm671_vm3, %v3866_v5, -inf }
 0x41e   :  { %v3872_v37 = vpop.f32.mrb[34].mxu0  ;;  %1893 = vmax.xlane.f32.xlu0 %v1892_v44  ;;  %v1886_v49 = vsel %vm671_vm3, %v3868_v7, -inf }
 0x41f   :  { %v1895_v45 = vsel %vm671_vm3, %v3872_v37, -inf  ;;  %v3876_v28 = vpop.f32.mrb[35].mxu0 }
 0x420   :  { %1896 = vmax.xlane.f32.xlu1 %v1895_v45  ;;  %v1889_v63 = vsel %vm671_vm3, %v3876_v28, -inf }
 0x422   :  { %1887 = vmax.xlane.f32.xlu0 %v1886_v49 }
 0x424   :  { %1890 = vmax.xlane.f32.xlu1 %v1889_v63 }
 0x434   :  { %v3882_v52 = vpop.f32.mrb[28].mxu1 }
 0x435   :  { %4597 = vst [vmem:[#allocation18_spill] sm:$0xff] %v3882_v52  ;;  %v2954_v24 = vpop.f32.mrb[29].mxu1 }
 0x436   :  { %v1193_v55 = vpop.f32.mrb[30].mxu1 }
 0x437   :  { %v2955_v58 = vpop.f32.mrb[31].mxu1 }
 0x43c   :  { %v3884_v12 = vpop.f32.mrb[32].mxu1 }
 0x43d   :  { %v3886_v1 = vpop.f32.mrb[33].mxu1  ;;  %v1904_v35 = vsel %vm671_vm3, %v3884_v12, -inf }
 0x43e   :  { %1905 = vmax.xlane.f32.xlu0 %v1904_v35  ;;  %v3890_v23 = vpop.f32.mrb[34].mxu1 }
 0x43f   :  { %v3892_v3 = vpop.f32.mrb[35].mxu1  ;;  %v1907_v4 = vsel %vm671_vm3, %v3890_v23, -inf }
 0x440   :  { %1908 = vmax.xlane.f32.xlu1 %v1907_v4  ;;  %v1898_v4 = vsel %vm671_vm3, %v3886_v1, -inf  ;;  %v1901_v59 = vsel %vm671_vm3, %v3892_v3, -inf }
 0x444   :  { %v3896_v13 = vpop.f32.mrb[36].mxu1 }
 0x445   :  { %v3898_v47 = vpop.f32.mrb[37].mxu1 }
 0x446   :  { %v3900_v44 = vpop.f32.mrb[38].mxu1 }
 0x447   :  { %v3902_v45 = vpop.f32.mrb[39].mxu1  ;;  %v3904_v49 = vpop.f32.mrb[36].mxu0  ;;  %v1919_v53 = vsel %vm671_vm3, %v3900_v44, -inf }
 0x448   :  { %v3906_v63 = vpop.f32.mrb[37].mxu0  ;;  %v1928_v24 = vsel %vm671_vm3, %v3904_v49, -inf  ;;  %v1913_v46 = vsel %vm671_vm3, %v3902_v45, -inf }
 0x449   :  { %1929 = vmax.xlane.f32.xlu0 %v1928_v24  ;;  %v3910_v55 = vpop.f32.mrb[38].mxu0 }
 0x44a   :  { %v3912_v58 = vpop.f32.mrb[39].mxu0  ;;  %v1931_v35 = vsel %vm671_vm3, %v3910_v55, -inf }
 0x44b   :  { %1932 = vmax.xlane.f32.xlu1 %v1931_v35  ;;  %v1922_v35 = vsel %vm671_vm3, %v3906_v63, -inf }
 0x44c   :  { %v3918_v18 = vpop.f32.mrb[40].mxu1 }
 0x44d   :  { %1899 = vmax.xlane.f32.xlu0 %v1898_v4  ;;  %v3920_v52 = vpop.f32.mrb[41].mxu1  ;;  %v1925_v4 = vsel %vm671_vm3, %v3912_v58, -inf }
 0x44e   :  { %v3924_v24 = vpop.f32.mrb[42].mxu1 }
 0x44f   :  { %1902 = vmax.xlane.f32.xlu1 %v1901_v59  ;;  %v3926_v48 = vpop.f32.mrb[40].mxu0  ;;  %v3928_v22 = vpop.f32.mrb[43].mxu1  ;;  %v1916_v59 = vsel %vm671_vm3, %v3896_v13, -inf }
 0x450   :  { %v3932_v41 = vpop.f32.mrb[41].mxu0 }
 0x451   :  { %1923 = vmax.xlane.f32.xlu0 %v1922_v35  ;;  %v3934_v15 = vpop.f32.mrb[42].mxu0  ;;  %v1940_v35 = vsel %vm671_vm3, %v3926_v48, -inf  ;;  %v1934_v36 = vsel %vm671_vm3, %v3932_v41, -inf }
 0x452   :  { %v3938_v57 = vpop.f32.mrb[43].mxu0 }
 0x453   :  { %1926 = vmax.xlane.f32.xlu1 %v1925_v4  ;;  %v1943_v4 = vsel %vm671_vm3, %v3934_v15, -inf }
 0x454   :  { %v3942_v61 = vpop.f32.mrb[44].mxu1 }
 0x455   :  { %1917 = vmax.xlane.f32.xlu0 %v1916_v59  ;;  %v3944_v56 = vpop.f32.mrb[45].mxu1  ;;  %v1910_v59 = vsel %vm671_vm3, %v3898_v47, -inf }
 0x456   :  { %v3950_v27 = vpop.f32.mrb[46].mxu1 }
 0x457   :  { %1920 = vmax.xlane.f32.xlu1 %v1919_v53  ;;  %v3952_v11 = vpop.f32.mrb[47].mxu1  ;;  %v1937_v53 = vsel %vm671_vm3, %v3938_v57, -inf  ;;  %v1967_v40 = vsel %vm671_vm3, %v3950_v27, -inf }
 0x459   :  { %1941 = vmax.xlane.f32.xlu0 %v1940_v35  ;;  %v1952_v35 = vsel %vm671_vm3, %v3918_v18, -inf }
 0x45b   :  { %1944 = vmax.xlane.f32.xlu1 %v1943_v4  ;;  %v1955_v4 = vsel %vm671_vm3, %v3924_v24, -inf }
 0x45d   :  { %1911 = vmax.xlane.f32.xlu0 %v1910_v59  ;;  %v1946_v59 = vsel %vm671_vm3, %v3920_v52, -inf }
 0x45f   :  { %1914 = vmax.xlane.f32.xlu1 %v1913_v46  ;;  %v1949_v46 = vsel %vm671_vm3, %v3928_v22, -inf }
 0x461   :  { %1935 = vmax.xlane.f32.xlu0 %v1934_v36  ;;  %v1964_v36 = vsel %vm671_vm3, %v3942_v61, -inf }
 0x463   :  { %1938 = vmax.xlane.f32.xlu1 %v1937_v53  ;;  %v1958_v53 = vsel %vm671_vm3, %v3944_v56, -inf }
 0x465   :  { %1953 = vmax.xlane.f32.xlu0 %v1952_v35  ;;  %v1961_v35 = vsel %vm671_vm3, %v3952_v11, -inf }
 0x467   :  { %1956 = vmax.xlane.f32.xlu1 %v1955_v4 }
 0x469   :  { %1947 = vmax.xlane.f32.xlu0 %v1946_v59 }
 0x46b   :  { %1950 = vmax.xlane.f32.xlu1 %v1949_v46 }
 0x46d   :  { %1965 = vmax.xlane.f32.xlu0 %v1964_v36 }
 0x46f   :  { %1968 = vmax.xlane.f32.xlu1 %v1967_v40 }
 0x471   :  { %1959 = vmax.xlane.f32.xlu0 %v1958_v53 }
 0x473   :  { %1962 = vmax.xlane.f32.xlu1 %v1961_v35 }
 0x484   :  { %2235 = vrot.lane.b32.xlu1 %v3796_v2, %s3323_s19 }
 0x487   :  { %2178 = vrot.lane.b32.xlu0 %v3713_v19, %s3323_s19  ;;  %v864_v19 = vsel %vm671_vm3, %v3640_v38, 0.0 }
 0x488   :  { %2292 = vrot.lane.b32.xlu1 %v3738_v0, %s3323_s19 }
 0x48b   :  { %2349 = vrot.lane.b32.xlu0 %v3820_v14, %s3323_s19 }
 0x4a3   :  { %v1882_v4 = vpop.xlane.xlu0 %1881 }
 0x4a4   :  { %v1972_v40 = vsub.f32 %v3850_v51, %v1882_v4  ;;  %v867_v51 = vsel %vm671_vm3, %v3645_v21, 0.0 }
 0x4a5   :  { %v1885_v59 = vpop.xlane.xlu1 %1884 }
 0x4a6   :  { %v2006_v46 = vmul.f32 1.442695, %v1972_v40  ;;  %v1973_v36 = vsub.f32 %v3856_v30, %v1885_v59 }
 0x4a7   :  { %v1876_v53 = vpop.xlane.xlu0 %1875 }
 0x4a8   :  { %3130 = vpow2.f32 %v2006_v46  ;;  %v2008_v35 = vmul.f32 1.442695, %v1973_v36  ;;  %v1970_v2 = vsub.f32 %v3852_v62, %v1876_v53 }
 0x4a9   :  { %v1879_v10 = vpop.xlane.xlu1 %1878 }
 0x4aa   :  { %3132 = vpow2.f32 %v2008_v35  ;;  %v2002_v0 = vmul.f32 1.442695, %v1970_v2  ;;  %v1971_v14 = vsub.f32 %v3860_v29, %v1879_v10  ;;  %865 = vadd.xlane.f32.xlu0 %v864_v19 }
 0x4ab   :  { %v1894_v25 = vpop.xlane.xlu0 %1893 }
 0x4ac   :  { %3134 = vpow2.f32 %v2002_v0  ;;  %v2004_v30 = vmul.f32 1.442695, %v1971_v14  ;;  %v1976_v4 = vsub.f32 %v3866_v5, %v1894_v25  ;;  %868 = vadd.xlane.f32.xlu1 %v867_v51 }
 0x4ad   :  { %v1897_v40 = vpop.xlane.xlu1 %1896 }
 0x4ae   :  { %3136 = vpow2.f32 %v2004_v30  ;;  %v2014_v62 = vmul.f32 1.442695, %v1976_v4  ;;  %v1977_v59 = vsub.f32 %v3872_v37, %v1897_v40  ;;  %v4598_v40 = vmov 0.0  }
 0x4af   :  { %v1888_v38 = vpop.xlane.xlu0 %1887 }
 0x4b0   :  { %v2016_v46 = vmul.f32 1.442695, %v1977_v59  ;;  %v1974_v36 = vsub.f32 %v3868_v7, %v1888_v38  ;;  %3138 = vpow2.f32 %v2014_v62 }
 0x4b1   :  { %v1891_v10 = vpop.xlane.xlu1 %1890 }
 0x4b2   :  { %v3131_v29 = vpop.eup %3130  ;;  %3140 = vpow2.f32 %v2016_v46  ;;  %v2010_v53 = vmul.f32 1.442695, %v1974_v36  ;;  %v1975_v21 = vsub.f32 %v3876_v28, %v1891_v10 }
 0x4b3   :  { %v2072_v35 = vsel %vm671_vm3, %v3131_v29, 0.0 }
 0x4b4   :  { %v3133_v25 = vpop.eup %3132  ;;  %v2012_v5 = vmul.f32 1.442695, %v1975_v21  ;;  %2073 = vadd.xlane.f32.xlu0 %v2072_v35  ;;  %3142 = vpow2.f32 %v2010_v53 }
 0x4b5   :  { %v2163_v2 = vpack.c.bf16 %v3133_v25, %v3131_v29  ;;  %v2075_v37 = vsel %vm671_vm3, %v3133_v25, 0.0 }
 0x4b6   :  { %v3135_v19 = vpop.eup %3134  ;;  %3144 = vpow2.f32 %v2012_v5 }
 0x4b7   :  { %v2066_v7 = vsel %vm671_vm3, %v3135_v19, 0.0  ;;  %v2187_v10 = vsel %vm671_vm3, %v2163_v2, 0 }
 0x4b8   :  { %v3137_v0 = vpop.eup %3136  ;;  %2076 = vadd.xlane.f32.xlu0 %v2075_v37  ;;  %2067 = vadd.xlane.f32.xlu1 %v2066_v7 }
 0x4b9   :  { %v2162_v14 = vpack.c.bf16 %v3137_v0, %v3135_v19  ;;  %v2069_v28 = vsel %vm671_vm3, %v3137_v0, 0.0 }
 0x4ba   :  { %v3139_v51 = vpop.eup %3138 }
 0x4bb   :  { %v2184_v30 = vsel %vm671_vm3, %v2162_v14, 0  ;;  %v2084_v38 = vsel %vm671_vm3, %v3139_v51, 0.0 }
 0x4bc   :  { %v3141_v4 = vpop.eup %3140  ;;  %2070 = vadd.xlane.f32.xlu0 %v2069_v28  ;;  %2997 = vmatpush3.bf16.xpose.msra.mxu0 %v2184_v30 }
 0x4bd   :  { %2998 = vmatprep.subr.bf16.mxu0 %v4598_v40  ;;  %v2165_v62 = vpack.c.bf16 %v3141_v4, %v3139_v51  ;;  %v2087_v53 = vsel %vm671_vm3, %v3141_v4, 0.0 }
 0x4be   :  { %v3143_v59 = vpop.eup %3142 }
 0x4bf   :  { %v2078_v29 = vsel %vm671_vm3, %v3143_v59, 0.0  ;;  %v2193_v0 = vsel %vm671_vm3, %v2165_v62, 0 }
 0x4c0   :  { %v3145_v46 = vpop.eup %3144  ;;  %2085 = vadd.xlane.f32.xlu0 %v2084_v38 }
 0x4c1   :  { %v2164_v36 = vpack.c.bf16 %v3145_v46, %v3143_v59  ;;  %v2081_v25 = vsel %vm671_vm3, %v3145_v46, 0.0 }
 0x4c3   :  { %v2190_v35 = vsel %vm671_vm3, %v2164_v36, 0 }
 0x4c4   :  { %2999 = vmatpush3.bf16.xpose.msra.mxu0 %v2187_v10  ;;  %2079 = vadd.xlane.f32.xlu0 %v2078_v29 }
 0x4c5   :  { %3000 = vmatprep.subr.bf16.mxu0 %v4598_v40 }
 0x4c8   :  { %2088 = vadd.xlane.f32.xlu0 %v2087_v53 }
 0x4cb   :  { %v1906_v21 = vpop.xlane.xlu0 %1905 }
 0x4cc   :  { %v1980_v5 = vsub.f32 %v3884_v12, %v1906_v21  ;;  %3001 = vmatpush3.bf16.xpose.msra.mxu0 %v2190_v35  ;;  %2082 = vadd.xlane.f32.xlu0 %v2081_v25 }
 0x4cd   :  { %v1909_v19 = vpop.xlane.xlu1 %1908  ;;  %3002 = vmatprep.subr.bf16.mxu0 %v4598_v40 }
 0x4ce   :  { %v2022_v2 = vmul.f32 1.442695, %v1980_v5  ;;  %v1981_v37 = vsub.f32 %v3890_v23, %v1909_v19 }
 0x4d0   :  { %3146 = vpow2.f32 %v2022_v2  ;;  %v2024_v7 = vmul.f32 1.442695, %v1981_v37 }
 0x4d2   :  { %3148 = vpow2.f32 %v2024_v7 }
 0x4d4   :  { %3003 = vmatpush3.bf16.xpose.msra.mxu0 %v2193_v0 }
 0x4d5   :  { %3020 = vmatprep.subr.bf16.mxu0 %v4598_v40 }
 0x4d6   :  { %v1930_v14 = vpop.xlane.xlu0 %1929 }
 0x4d7   :  { %v1988_v51 = vsub.f32 %v3904_v49, %v1930_v14 }
 0x4d8   :  { %v1933_v12 = vpop.xlane.xlu1 %1932 }
 0x4d9   :  { %v2038_v28 = vmul.f32 1.442695, %v1988_v51  ;;  %v1989_v30 = vsub.f32 %v3910_v55, %v1933_v12 }
 0x4da   :  { %v4020_v4 = vpop.eup %3146  ;;  %v1900_v59 = vpop.xlane.xlu0 %1899 }
 0x4db   :  { %3150 = vpow2.f32 %v2038_v28  ;;  %v2040_v23 = vmul.f32 1.442695, %v1989_v30  ;;  %v1978_v38 = vsub.f32 %v3886_v1, %v1900_v59  ;;  %v2096_v62 = vsel %vm671_vm3, %v4020_v4, 0.0 }
 0x4dc   :  { %v4025_v46 = vpop.eup %3148  ;;  %v1903_v36 = vpop.xlane.xlu1 %1902  ;;  %2097 = vadd.xlane.f32.xlu1 %v2096_v62 }
 0x4dd   :  { %3152 = vpow2.f32 %v2040_v23  ;;  %v2018_v49 = vmul.f32 1.442695, %v1978_v38  ;;  %v1979_v10 = vsub.f32 %v3892_v3, %v1903_v36  ;;  %v2167_v55 = vpack.c.bf16 %v4025_v46, %v4020_v4 }
 0x4de   :  { %v1924_v29 = vpop.xlane.xlu0 %1923  ;;  %v2099_v1 = vsel %vm671_vm3, %v4025_v46, 0.0 }
 0x4df   :  { %3154 = vpow2.f32 %v2018_v49  ;;  %v2020_v53 = vmul.f32 1.442695, %v1979_v10  ;;  %v1986_v21 = vsub.f32 %v3906_v63, %v1924_v29 }
 0x4e0   :  { %v1927_v35 = vpop.xlane.xlu1 %1926  ;;  %2100 = vadd.xlane.f32.xlu1 %v2099_v1 }
 0x4e1   :  { %3156 = vpow2.f32 %v2020_v53  ;;  %v2034_v25 = vmul.f32 1.442695, %v1986_v21  ;;  %v1987_v5 = vsub.f32 %v3912_v58, %v1927_v35 }
 0x4e2   :  { %v1918_v19 = vpop.xlane.xlu0 %1917 }
 0x4e3   :  { %3158 = vpow2.f32 %v2034_v25  ;;  %v2036_v3 = vmul.f32 1.442695, %v1987_v5  ;;  %v1984_v2 = vsub.f32 %v3896_v13, %v1918_v19 }
 0x4e4   :  { %v1921_v37 = vpop.xlane.xlu1 %1920 }
 0x4e5   :  { %v4035_v7 = vpop.eup %3150  ;;  %3160 = vpow2.f32 %v2036_v3  ;;  %v2030_v0 = vmul.f32 1.442695, %v1984_v2  ;;  %v1985_v63 = vsub.f32 %v3900_v44, %v1921_v37 }
 0x4e6   :  { %v1942_v14 = vpop.xlane.xlu0 %1941  ;;  %v2120_v51 = vsel %vm671_vm3, %v4035_v7, 0.0 }
 0x4e7   :  { %v4040_v12 = vpop.eup %3152  ;;  %3162 = vpow2.f32 %v2030_v0  ;;  %v2032_v58 = vmul.f32 1.442695, %v1985_v63  ;;  %v1992_v28 = vsub.f32 %v3926_v48, %v1942_v14  ;;  %2121 = vadd.xlane.f32.xlu0 %v2120_v51 }
 0x4e8   :  { %v1945_v30 = vpop.xlane.xlu1 %1944  ;;  %v2171_v13 = vpack.c.bf16 %v4040_v12, %v4035_v7  ;;  %v888_v7 = vsel %vm671_vm3, %v3702_v16, 0.0 }
 0x4e9   :  { %v3155_v59 = vpop.eup %3154  ;;  %3164 = vpow2.f32 %v2032_v58  ;;  %v2046_v23 = vmul.f32 1.442695, %v1992_v28  ;;  %v1993_v44 = vsub.f32 %v3934_v15, %v1945_v30 }
 0x4ea   :  { %v1912_v38 = vpop.xlane.xlu0 %1911  ;;  %v2090_v62 = vsel %vm671_vm3, %v3155_v59, 0.0 }
 0x4eb   :  { %v3157_v36 = vpop.eup %3156  ;;  %3166 = vpow2.f32 %v2046_v23  ;;  %v2048_v49 = vmul.f32 1.442695, %v1993_v44  ;;  %v1982_v10 = vsub.f32 %v3898_v47, %v1912_v38  ;;  %2091 = vadd.xlane.f32.xlu0 %v2090_v62 }
 0x4ec   :  { %v1915_v48 = vpop.xlane.xlu1 %1914  ;;  %v2093_v29 = vsel %vm671_vm3, %v3157_v36, 0.0  ;;  %v2166_v53 = vpack.c.bf16 %v3157_v36, %v3155_v59 }
 0x4ed   :  { %v4049_v21 = vpop.eup %3158  ;;  %3168 = vpow2.f32 %v2048_v49  ;;  %v2026_v1 = vmul.f32 1.442695, %v1982_v10  ;;  %v1983_v35 = vsub.f32 %v3902_v45, %v1915_v48  ;;  %2094 = vadd.xlane.f32.xlu1 %v2093_v29 }
 0x4ee   :  { %v1936_v15 = vpop.xlane.xlu0 %1935  ;;  %v2241_v25 = vsel %vm671_vm3, %v2166_v53, 0  ;;  %v2114_v5 = vsel %vm671_vm3, %v4049_v21, 0.0 }
 0x4ef   :  { %v4055_v19 = vpop.eup %3160  ;;  %3170 = vpow2.f32 %v2026_v1  ;;  %v2028_v47 = vmul.f32 1.442695, %v1983_v35  ;;  %v1990_v3 = vsub.f32 %v3932_v41, %v1936_v15  ;;  %3009 = vmatpush3.bf16.xpose.msra.mxu1 %v2241_v25  ;;  %2115 = vadd.xlane.f32.xlu0 %v2114_v5  ;;  %v2123_v41 = vsel %vm671_vm3, %v4040_v12, 0.0 }
 0x4f0   :  { %v1939_v2 = vpop.xlane.xlu1 %1938  ;;  %v2117_v37 = vsel %vm671_vm3, %v4055_v19, 0.0  ;;  %3010 = vmatprep.subr.bf16.mxu1 %v4598_v40  ;;  %v2170_v45 = vpack.c.bf16 %v4055_v19, %v4049_v21 }
 0x4f1   :  { %v4063_v0 = vpop.eup %3162  ;;  %3172 = vpow2.f32 %v2028_v47  ;;  %v2042_v63 = vmul.f32 1.442695, %v1990_v3  ;;  %v1991_v14 = vsub.f32 %v3938_v57, %v1939_v2  ;;  %2118 = vadd.xlane.f32.xlu1 %v2117_v37 }
 0x4f2   :  { %v1954_v51 = vpop.xlane.xlu0 %1953  ;;  %v2108_v23 = vsel %vm671_vm3, %v4063_v0, 0.0 }
 0x4f3   :  { %v4068_v58 = vpop.eup %3164  ;;  %3174 = vpow2.f32 %v2042_v63  ;;  %v2044_v28 = vmul.f32 1.442695, %v1991_v14  ;;  %v1996_v30 = vsub.f32 %v3918_v18, %v1954_v51  ;;  %2124 = vadd.xlane.f32.xlu0 %v2123_v41  ;;  %v2244_v18 = vsel %vm671_vm3, %v2167_v55, 0 }
 0x4f4   :  { %v1957_v59 = vpop.xlane.xlu1 %1956  ;;  %v2169_v44 = vpack.c.bf16 %v4068_v58, %v4063_v0  ;;  %v2111_v14 = vsel %vm671_vm3, %v4068_v58, 0.0  ;;  %v2301_v58 = vsel %vm671_vm3, %v2171_v13, 0 }
 0x4f5   :  { %v4075_v57 = vpop.eup %3166  ;;  %3176 = vpow2.f32 %v2044_v28  ;;  %v2054_v38 = vmul.f32 1.442695, %v1996_v30  ;;  %v1997_v62 = vsub.f32 %v3924_v24, %v1957_v59  ;;  %2109 = vadd.xlane.f32.xlu1 %v2108_v23 }
 0x4f6   :  { %v1948_v36 = vpop.xlane.xlu0 %1947  ;;  %v2132_v49 = vsel %vm671_vm3, %v4075_v57, 0.0 }
 0x4f7   :  { %v4084_v10 = vpop.eup %3168  ;;  %v2056_v48 = vmul.f32 1.442695, %v1997_v62  ;;  %v1994_v29 = vsub.f32 %v3920_v52, %v1948_v36  ;;  %3011 = vmatpush3.bf16.xpose.msra.mxu1 %v2244_v18  ;;  %2133 = vadd.xlane.f32.xlu0 %v2132_v49  ;;  %3178 = vpow2.f32 %v2054_v38 }
 0x4f8   :  { %v1951_v53 = vpop.xlane.xlu1 %1950  ;;  %3012 = vmatprep.subr.bf16.mxu1 %v4598_v40  ;;  %v2173_v24 = vpack.c.bf16 %v4084_v10, %v4075_v57  ;;  %v2135_v49 = vsel %vm671_vm3, %v4084_v10, 0.0  ;;  %v873_v57 = vsel %vm671_vm3, %v3638_v26, 0.0 }
 0x4f9   :  { %v3171_v4 = vpop.eup %3170  ;;  %3180 = vpow2.f32 %v2056_v48  ;;  %v2050_v46 = vmul.f32 1.442695, %v1994_v29  ;;  %v1995_v55 = vsub.f32 %v3928_v22, %v1951_v53  ;;  %v2298_v48 = vsel %vm671_vm3, %v2170_v45, 0 }
 0x4fa   :  { %v1966_v1 = vpop.xlane.xlu0 %1965  ;;  %v2102_v35 = vsel %vm671_vm3, %v3171_v4, 0.0  ;;  %v2250_v53 = vsel %vm671_vm3, %v2169_v44, 0 }
 0x4fb   :  { %v3173_v15 = vpop.eup %3172  ;;  %v2052_v25 = vmul.f32 1.442695, %v1995_v55  ;;  %v2000_v52 = vsub.f32 %v3942_v61, %v1966_v1  ;;  %2103 = vadd.xlane.f32.xlu1 %v2102_v35  ;;  %3182 = vpow2.f32 %v2050_v46  ;;  %v891_v55 = vsel %vm671_vm3, %v3705_v43, 0.0 }
 0x4fc   :  { %v1969_v5 = vpop.xlane.xlu1 %1968  ;;  %v2168_v47 = vpack.c.bf16 %v3173_v15, %v3171_v4  ;;  %v2105_v36 = vsel %vm671_vm3, %v3173_v15, 0.0  ;;  %v915_v43 = vsel %vm671_vm3, %v3652_v50, 0.0  ;;  %v912_v50 = vsel %vm671_vm3, %v3648_v34, 0.0 }
 0x4fd   :  { %v4093_v3 = vpop.eup %3174  ;;  %3184 = vpow2.f32 %v2052_v25  ;;  %v2062_v2 = vmul.f32 1.442695, %v2000_v52  ;;  %v2001_v37 = vsub.f32 %v3950_v27, %v1969_v5 }
 0x4fe   :  { %v1960_v63 = vpop.xlane.xlu0 %1959  ;;  %v2247_v22 = vsel %vm671_vm3, %v2168_v47, 0  ;;  %v2126_v51 = vsel %vm671_vm3, %v4093_v3, 0.0 }
 0x4ff   :  { %v4101_v61 = vpop.eup %3176  ;;  %v2064_v41 = vmul.f32 1.442695, %v2001_v37  ;;  %v1998_v28 = vsub.f32 %v3944_v56, %v1960_v63  ;;  %3013 = vmatpush3.bf16.xpose.msra.mxu1 %v2247_v22  ;;  %2112 = vadd.xlane.f32.xlu1 %v2111_v14  ;;  %3186 = vpow2.f32 %v2062_v2  ;;  %v870_v2 = vsel %vm671_vm3, %v3635_v42, 0.0 }
 0x500   :  { %2127 = vadd.xlane.f32.xlu0 %v2126_v51  ;;  %v1963_v30 = vpop.xlane.xlu1 %1962  ;;  %3014 = vmatprep.subr.bf16.mxu1 %v4598_v40  ;;  %v2172_v27 = vpack.c.bf16 %v4101_v61, %v4093_v3  ;;  %v2129_v45 = vsel %vm671_vm3, %v4101_v61, 0.0  ;;  %v936_v3 = vsel %vm671_vm3, %v3775_v6, 0.0  ;;  %v2307_v37 = vsel %vm671_vm3, %v2173_v24, 0 }
 0x501   :  { %3188 = vpow2.f32 %v2064_v41  ;;  %v2058_v59 = vmul.f32 1.442695, %v1998_v28  ;;  %v1999_v23 = vsub.f32 %v3952_v11, %v1963_v30  ;;  %v3179_v38 = vpop.eup %3178  ;;  %v918_v22 = vsel %vm671_vm3, %v3627_v8, 0.0 }
 0x502   :  { %v2179_v62 = vpop.permute.xlu0 %2178  ;;  %v2144_v21 = vsel %vm671_vm3, %v3179_v38, 0.0  ;;  %v2304_v5 = vsel %vm671_vm3, %v2172_v27, 0  ;;  %v921_v8 = vsel %vm671_vm3, %v3629_v9, 0.0  ;;  %v876_v51 = vsel %vm671_vm3, %v3686_v39, 0.0 }
 0x503   :  { %v3181_v18 = vpop.eup %3180  ;;  %v2060_v56 = vmul.f32 1.442695, %v1999_v23  ;;  %2106 = vadd.xlane.f32.xlu1 %v2105_v36  ;;  %3005 = vmatmul.mubr.msk.bf16.vlgmr.msra.gmra.mrb[44].mxu0 %vm671_vm3, %v2179_v62  ;;  %3190 = vpow2.f32 %v2058_v59  ;;  %v894_v61 = vsel %vm671_vm3, %v3696_v32, 0.0  ;;  %v924_v9 = vsel %vm671_vm3, %v3672_v31, 0.0  ;;  %v4600_v59 = vld [vmem:[#allocation2_spill] sm:$0xff]  ;;  %v4602_v36 = vld [vmem:[#allocation4_spill] sm:$0xff] }
 0x504   :  { %2136 = vadd.xlane.f32.xlu0 %v2135_v49  ;;  %3021 = vmatpush3.bf16.xpose.msra.mxu0 %v2298_v48  ;;  %v2175_v11 = vpack.c.bf16 %v3181_v18, %v3179_v38  ;;  %v2236_v35 = vpop.permute.xlu1 %2235  ;;  %v2147_v13 = vsel %vm671_vm3, %v3181_v18, 0.0  ;;  %v942_v41 = vsel %vm671_vm3, %v3765_v60, 0.0  ;;  %v1260_v39 = vlaneseq  ;;  %v4599_v60 = vld [vmem:[#allocation10_spill] sm:$0xff]  ;;  %v4601_v38 = vld [vmem:[#allocation8_spill] sm:$0xff] }
 0x505   :  { %3192 = vpow2.f32 %v2060_v56  ;;  %3022 = vmatprep.subr.bf16.mxu0 %v4598_v40  ;;  %3028 = vmatprep.mubr.msk.bf16.mxu0 %vm3325_vm4, %v4598_v40  ;;  %v3183_v29 = vpop.eup %3182  ;;  %v897_v28 = vsel %vm671_vm3, %v3698_v54, 0.0  ;;  %v927_v32 = vsel %vm671_vm3, %v3675_v33, 0.0  ;;  %v882_v23 = vsel %vm671_vm3, %v4600_v59, 0.0 }
 0x506   :  { %v2138_v0 = vsel %vm671_vm3, %v3183_v29, 0.0  ;;  %v2358_v47 = vsel %vm671_vm3, %v2175_v11, 0  ;;  %v2350_v26 = vpop.permute.xlu0 %2349  ;;  %v4191_v31 = vand.u32 127, %v1260_v39  ;;  %v4197_v54 = vshrl.u32 %v1260_v39, 7  ;;  %v4603_v11 = vld [vmem:[#allocation13_spill] sm:$0xff] }
 0x507   :  { %v3185_v19 = vpop.eup %3184  ;;  %3015 = vmatpush3.bf16.xpose.msra.mxu1 %v2250_v53  ;;  %2145 = vadd.xlane.f32.xlu1 %v2144_v21  ;;  %v900_v62 = vsel %vm671_vm3, %v4601_v38, 0.0  ;;  %v930_v18 = vsel %vm671_vm3, %v4602_v36, 0.0  ;;  %v4604_v53 = vld [vmem:[#allocation3_spill] sm:$0xff] }
 0x508   :  { %2130 = vadd.xlane.f32.xlu0 %v2129_v45  ;;  %3032 = vmatprep.subr.bf16.mxu1 %v4598_v40  ;;  %v2174_v4 = vpack.c.bf16 %v3185_v19, %v3183_v29  ;;  %v2141_v16 = vsel %vm671_vm3, %v3185_v19, 0.0  ;;  %v2293_v42 = vpop.permute.xlu1 %2292  ;;  %v1266_v33 = vadd.s32 4294967288, %v4191_v31  ;;  %v4206_v56 = vsub.s32 %v4191_v31, %v4197_v54 }
 0x509   :  { %v3187_v46 = vpop.eup %3186  ;;  %v948_v29 = vsel %vm671_vm3, %v4603_v11, 0.0  ;;  %v885_v21 = vsel %vm671_vm3, %v4604_v53, 0.0 }
 0x50a   :  { %v2355_v25 = vsel %vm671_vm3, %v2174_v4, 0  ;;  %v2156_v34 = vsel %vm671_vm3, %v3187_v46, 0.0  ;;  %v4209_v49 = vsub.s32 %v1266_v33, %v4197_v54 }
 0x50b   :  { %v3189_v1 = vpop.eup %3188  ;;  %892 = vadd.xlane.f32.xlu1 %v891_v55 }
 0x50c   :  { %2139 = vadd.xlane.f32.xlu0 %v2138_v0  ;;  %3023 = vmatpush3.bf16.xpose.msra.mxu0 %v2301_v58  ;;  %v2177_v44 = vpack.c.bf16 %v3189_v1, %v3187_v46  ;;  %v2159_v14 = vsel %vm671_vm3, %v3189_v1, 0.0  ;;  %v4605_v46 = vld [vmem:[#allocation9_spill] sm:$0xff] }
 0x50d   :  { %3024 = vmatprep.subr.bf16.mxu0 %v4598_v40  ;;  %v3191_v15 = vpop.eup %3190  ;;  %v903_v55 = vsel %vm671_vm3, %v4605_v46, 0.0  ;;  %v4606_v0 = vld [vmem:[#allocation5_spill] sm:$0xff] }
 0x50e   :  { %3017 = vmatmul.mubr.msk.bf16.vlgmr.msra.gmra.mrb[48].mxu1 %vm671_vm3, %v2236_v35  ;;  %v2150_v6 = vsel %vm671_vm3, %v3191_v15, 0.0  ;;  %v2364_v10 = vsel %vm671_vm3, %v2177_v44, 0  ;;  %v933_v58 = vsel %vm671_vm3, %v4606_v0, 0.0  ;;  %v4607_v44 = vld [vmem:[#allocation14_spill] sm:$0xff] }
 0x50f   :  { %v3193_v52 = vpop.eup %3192  ;;  %916 = vadd.xlane.f32.xlu1 %v915_v43  ;;  %3033 = vmatpush3.bf16.xpose.msra.mxu1 %v2355_v25  ;;  %v951_v35 = vsel %vm671_vm3, %v4607_v44, 0.0  ;;  %v4608_v43 = vld [vmem:[#allocation6_spill] sm:$0xff] }
 0x510   :  { %889 = vadd.xlane.f32.xlu0 %v888_v7  ;;  %3034 = vmatprep.subr.bf16.mxu1 %v4598_v40  ;;  %v2176_v12 = vpack.c.bf16 %v3193_v52, %v3191_v15  ;;  %v2153_v24 = vsel %vm671_vm3, %v3193_v52, 0.0  ;;  %v906_v25 = vsel %vm671_vm3, %v4608_v43, 0.0  ;;  %v4609_v7 = vld [vmem:[#allocation11_spill] sm:$0xff] }
 0x511   :  { %3040 = vmatprep.mubr.msk.bf16.mxu1 %vm3325_vm4, %v4598_v40 }
 0x512   :  { %v2361_v63 = vsel %vm671_vm3, %v2176_v12, 0  ;;  %v954_v12 = vsel %vm671_vm3, %v4609_v7, 0.0 }
 0x513   :  { %2148 = vadd.xlane.f32.xlu1 %v2147_v13  ;;  %v4610_v13 = vld [vmem:[#allocation7_spill] sm:$0xff] }
 0x514   :  { %913 = vadd.xlane.f32.xlu0 %v912_v50  ;;  %3025 = vmatpush3.bf16.xpose.msra.mxu0 %v2304_v5  ;;  %v909_v50 = vsel %vm671_vm3, %v4610_v13, 0.0 }
 0x515   :  { %3026 = vmatprep.subr.bf16.mxu0 %v4598_v40 }
 0x517   :  { %2142 = vadd.xlane.f32.xlu1 %v2141_v16  ;;  %3035 = vmatpush3.bf16.xpose.msra.mxu1 %v2358_v47  ;;  %v4611_v16 = vld [vmem:[#allocation12_spill] sm:$0xff] }
 0x518   :  { %937 = vadd.xlane.f32.xlu0 %v936_v3  ;;  %3036 = vmatprep.subr.bf16.mxu1 %v4598_v40  ;;  %v957_v47 = vsel %vm671_vm3, %v4611_v16, 0.0 }
 0x51b   :  { %2157 = vadd.xlane.f32.xlu1 %v2156_v34 }
 0x51c   :  { %871 = vadd.xlane.f32.xlu0 %v870_v2  ;;  %3027 = vmatpush3.bf16.xpose.msra.mxu0 %v2307_v37 }
 0x51f   :  { %3037 = vmatpush3.bf16.xpose.msra.mxu1 %v2361_v63  ;;  %2151 = vadd.xlane.f32.xlu1 %v2150_v6 }
 0x520   :  { %919 = vadd.xlane.f32.xlu0 %v918_v22  ;;  %3038 = vmatprep.subr.bf16.mxu1 %v4598_v40  ;;  %v939_v40 = vsel %vm671_vm3, %v3777_v17, 0.0  ;;  %v879_v17 = vsel %vm671_vm3, %v3690_v20, 0.0  ;;  %v945_v20 = vsel %vm671_vm3, %v4599_v60, 0.0 }
 0x523   :  { %3029 = vmatmul.mubr.msk.bf16.vlgmr.msra.gmra.mrb[48].mxu0 %vm671_vm3, %v2293_v42  ;;  %2160 = vadd.xlane.f32.xlu1 %v2159_v14 }
 0x524   :  { %874 = vadd.xlane.f32.xlu0 %v873_v57 }
 0x527   :  { %3039 = vmatpush3.bf16.xpose.msra.mxu1 %v2364_v10  ;;  %2154 = vadd.xlane.f32.xlu1 %v2153_v24 }
 0x528   :  { %922 = vadd.xlane.f32.xlu0 %v921_v8 }
 0x52b   :  { %940 = vadd.xlane.f32.xlu1 %v939_v40 }
 0x52c   :  { %877 = vadd.xlane.f32.xlu0 %v876_v51 }
 0x52e   :  { %3041 = vmatmul.mubr.msk.bf16.vlgmr.msra.gmra.mrb[52].mxu1 %vm671_vm3, %v2350_v26 }
 0x52f   :  { %895 = vadd.xlane.f32.xlu1 %v894_v61 }
 0x530   :  { %925 = vadd.xlane.f32.xlu0 %v924_v9 }
 0x533   :  { %943 = vadd.xlane.f32.xlu1 %v942_v41 }
 0x534   :  { %880 = vadd.xlane.f32.xlu0 %v879_v17 }
 0x537   :  { %898 = vadd.xlane.f32.xlu1 %v897_v28  ;;  %v866_v30 = vpop.xlane.xlu0 %865 }
 0x538   :  { %928 = vadd.xlane.f32.xlu0 %v927_v32  ;;  %3194 = vrcp.f32 %v866_v30 }
 0x539   :  { %v869_v27 = vpop.xlane.xlu1 %868 }
 0x53a   :  { %3196 = vrcp.f32 %v869_v27 }
 0x53b   :  { %946 = vadd.xlane.f32.xlu1 %v945_v20 }
 0x53c   :  { %883 = vadd.xlane.f32.xlu0 %v882_v23 }
 0x53f   :  { %901 = vadd.xlane.f32.xlu1 %v900_v62 }
 0x540   :  { %931 = vadd.xlane.f32.xlu0 %v930_v18 }
 0x541   :  { %v2074_v15 = vpop.xlane.xlu0 %2073 }
 0x542   :  { %v3195_v48 = vpop.eup %3194 }
 0x543   :  { %949 = vadd.xlane.f32.xlu1 %v948_v29  ;;  %v1265_v45 = vrot.slane %v3195_v48, %v4206_v56 }
 0x544   :  { %v3197_v19 = vpop.eup %3196  ;;  %886 = vadd.xlane.f32.xlu0 %v885_v21 }
 0x545   :  { %v1270_v4 = vrot.slane %v3197_v19, %v4209_v49  ;;  %v2077_v52 = vpop.xlane.xlu0 %2076  ;;  %v2068_v37 = vpop.xlane.xlu1 %2067 }
 0x547   :  { %v4220_v1 = vsel %vm1271_vm5, %v1270_v4, %v1265_v45  ;;  %904 = vadd.xlane.f32.xlu1 %v903_v55 }
 0x548   :  { %934 = vadd.xlane.f32.xlu0 %v933_v58 }
 0x549   :  { %v2071_v5 = vpop.xlane.xlu0 %2070 }
 0x54b   :  { %952 = vadd.xlane.f32.xlu1 %v951_v35 }
 0x54d   :  { %v2086_v3 = vpop.xlane.xlu0 %2085 }
 0x54f   :  { %907 = vadd.xlane.f32.xlu1 %v906_v25 }
 0x551   :  { %v2080_v34 = vpop.xlane.xlu0 %2079 }
 0x553   :  { %955 = vadd.xlane.f32.xlu1 %v954_v12 }
 0x555   :  { %v2089_v2 = vpop.xlane.xlu0 %2088 }
 0x557   :  { %910 = vadd.xlane.f32.xlu1 %v909_v50  ;;  %v1273_v50 = vadd.s32 4294967280, %v4191_v31 }
 0x559   :  { %v2083_v63 = vpop.xlane.xlu0 %2082 }
 0x55b   :  { %958 = vadd.xlane.f32.xlu1 %v957_v47 }
 0x569   :  { %v2098_v6 = vpop.xlane.xlu1 %2097 }
 0x56d   :  { %v2101_v42 = vpop.xlane.xlu1 %2100 }
 0x574   :  { %v2122_v22 = vpop.xlane.xlu0 %2121 }
 0x578   :  { %v2092_v14 = vpop.xlane.xlu0 %2091 }
 0x57a   :  { %v2095_v57 = vpop.xlane.xlu1 %2094 }
 0x57c   :  { %v2116_v10 = vpop.xlane.xlu0 %2115 }
 0x57e   :  { %v2119_v24 = vpop.xlane.xlu1 %2118 }
 0x580   :  { %v4234_v8 = vpop.xlane.xlu0 %2124 }
 0x582   :  { %v4236_v40 = vpop.xlane.xlu1 %2109 }
 0x584   :  { %v4240_v26 = vpop.xlane.xlu0 %2133 }
 0x588   :  { %v4238_v51 = vpop.xlane.xlu1 %2103 }
 0x58c   :  { %v4242_v61 = vpop.xlane.xlu1 %2112 }
 0x58d   :  { %v4244_v9 = vpop.xlane.xlu0 %2127 }
 0x590   :  { %v4246_v41 = vpop.xlane.xlu1 %2106 }
 0x591   :  { %v4248_v17 = vpop.xlane.xlu0 %2136 }
 0x594   :  { %v4250_v39 = vpop.xlane.xlu1 %2145 }
 0x595   :  { %v4252_v28 = vpop.xlane.xlu0 %2130 }
 0x598   :  { %v4254_v32 = vpop.xlane.xlu1 %892 }
 0x599   :  { %v4256_v30 = vpop.xlane.xlu0 %2139 }
 0x59c   :  { %v917_v27 = vpop.xlane.xlu1 %916 }
 0x59d   :  { %v4258_v60 = vpop.xlane.xlu0 %889  ;;  %3198 = vrcp.f32 %v917_v27 }
 0x5a0   :  { %v4260_v20 = vpop.xlane.xlu1 %2148 }
 0x5a1   :  { %v914_v59 = vpop.xlane.xlu0 %913 }
 0x5a2   :  { %3200 = vrcp.f32 %v914_v59 }
 0x5a3   :  { %3202 = vrcp.f32 %v2074_v15 }
 0x5a4   :  { %v4262_v23 = vpop.xlane.xlu1 %2142  ;;  %3204 = vrcp.f32 %v2068_v37 }
 0x5a5   :  { %v938_v33 = vpop.xlane.xlu0 %937  ;;  %3206 = vrcp.f32 %v2077_v52 }
 0x5a6   :  { %3208 = vrcp.f32 %v2071_v5 }
 0x5a7   :  { %v3199_v36 = vpop.eup %3198  ;;  %3210 = vrcp.f32 %v2086_v3  ;;  %v1280_v3 = vadd.s32 4294967272, %v4191_v31 }
 0x5a8   :  { %v4264_v38 = vpop.xlane.xlu1 %2157  ;;  %v1361_v11 = vrot.slane %v3199_v36, %v4209_v49  ;;  %3212 = vrcp.f32 %v2080_v34  ;;  %v1287_v34 = vadd.s32 4294967264, %v4191_v31 }
 0x5a9   :  { %v4266_v62 = vpop.xlane.xlu0 %871  ;;  %3214 = vrcp.f32 %v938_v33  ;;  %v4331_v27 = vsub.s32 %v1280_v3, %v4197_v54 }
 0x5aa   :  { %3216 = vrcp.f32 %v2089_v2  ;;  %v1294_v2 = vadd.s32 4294967256, %v4191_v31  ;;  %v4334_v59 = vsub.s32 %v1287_v34, %v4197_v54 }
 0x5ac   :  { %v3201_v18 = vpop.eup %3200  ;;  %v4268_v48 = vpop.xlane.xlu1 %2151  ;;  %v4339_v33 = vsub.s32 %v1294_v2, %v4197_v54 }
 0x5ad   :  { %v1357_v29 = vrot.slane %v3201_v18, %v4206_v56  ;;  %v4272_v53 = vpop.xlane.xlu0 %919  ;;  %v4285_v58 = vpop.eup %3202 }
 0x5ae   :  { %v3205_v44 = vpop.eup %3204 }
 0x5af   :  { %v4275_v21 = vsel %vm1271_vm5, %v1361_v11, %v1357_v29  ;;  %v4289_v15 = vpop.eup %3206  ;;  %v1301_v29 = vadd.s32 4294967248, %v4191_v31 }
 0x5b0   :  { %v4277_v19 = vpop.xlane.xlu1 %2160  ;;  %v3209_v25 = vpop.eup %3208 }
 0x5b1   :  { %v4279_v45 = vpop.xlane.xlu0 %874  ;;  %v4293_v52 = vpop.eup %3210 }
 0x5b2   :  { %v4295_v7 = vpop.eup %3212 }
 0x5b3   :  { %v3215_v13 = vpop.eup %3214 }
 0x5b4   :  { %v4281_v4 = vpop.xlane.xlu1 %2154  ;;  %v4300_v16 = vpop.eup %3216 }
 0x5b5   :  { %v4283_v46 = vpop.xlane.xlu0 %922 }
 0x5b8   :  { %v941_v55 = vpop.xlane.xlu1 %940 }
 0x5b9   :  { %3218 = vrcp.f32 %v941_v55  ;;  %v878_v0 = vpop.xlane.xlu0 %877 }
 0x5ba   :  { %3220 = vrcp.f32 %v2083_v63  ;;  %v2477_v63 = vrot.slane %v3209_v25, %v4209_v49  ;;  %v1308_v25 = vadd.s32 4294967240, %v4191_v31  ;;  %v4369_v31 = vsub.s32 %v1301_v29, %v4197_v54 }
 0x5bb   :  { %3222 = vrcp.f32 %v2098_v6  ;;  %v1396_v6 = vrot.slane %v3215_v13, %v4206_v56 }
 0x5bc   :  { %3224 = vrcp.f32 %v2101_v42  ;;  %v4287_v35 = vpop.xlane.xlu1 %895 }
 0x5bd   :  { %3226 = vrcp.f32 %v2122_v22  ;;  %v4291_v43 = vpop.xlane.xlu0 %925 }
 0x5be   :  { %3228 = vrcp.f32 %v2092_v14 }
 0x5bf   :  { %3230 = vrcp.f32 %v2095_v57  ;;  %v4318_v57 = vsub.s32 %v1273_v50, %v4197_v54 }
 0x5c0   :  { %3232 = vrcp.f32 %v2116_v10  ;;  %v4297_v12 = vpop.xlane.xlu1 %943 }
 0x5c1   :  { %3234 = vrcp.f32 %v2119_v24  ;;  %v881_v5 = vpop.xlane.xlu0 %880  ;;  %v2482_v11 = vrot.slane %v4285_v58, %v4318_v57 }
 0x5c2   :  { %3236 = vrcp.f32 %v4234_v8  ;;  %v2473_v8 = vrot.slane %v3205_v44, %v4206_v56  ;;  %v2492_v44 = vrot.slane %v4295_v7, %v4334_v59 }
 0x5c3   :  { %v3219_v47 = vpop.eup %3218  ;;  %3238 = vrcp.f32 %v4236_v40 }
 0x5c4   :  { %v4307_v37 = vpop.eup %3220  ;;  %3240 = vrcp.f32 %v4240_v26  ;;  %v1400_v22 = vrot.slane %v3219_v47, %v4209_v49  ;;  %v4313_v42 = vpop.xlane.xlu1 %898  ;;  %v2478_v36 = vsel %vm1271_vm5, %v2477_v63, %v2473_v8 }
 0x5c5   :  { %v4315_v14 = vpop.eup %3222  ;;  %3242 = vrcp.f32 %v4238_v51  ;;  %v929_v10 = vpop.xlane.xlu0 %928  ;;  %v2483_v58 = vsel %vm1278_vm6, %v2482_v11, %v2478_v36 }
 0x5c6   :  { %v4321_v24 = vpop.eup %3224  ;;  %3244 = vrcp.f32 %v4242_v61  ;;  %v4326_v40 = vsel %vm1271_vm5, %v1400_v22, %v1396_v6  ;;  %v4383_v6 = vsub.s32 %v1308_v25, %v4197_v54 }
 0x5c7   :  { %v4328_v26 = vpop.eup %3226  ;;  %3246 = vrcp.f32 %v4246_v41 }
 0x5c8   :  { %v3229_v51 = vpop.eup %3228  ;;  %3248 = vrcp.f32 %v4266_v62  ;;  %v4341_v61 = vpop.xlane.xlu1 %946 }
 0x5c9   :  { %v3231_v18 = vpop.eup %3230  ;;  %3250 = vrcp.f32 %v4272_v53  ;;  %v884_v41 = vpop.xlane.xlu0 %883  ;;  %v2487_v53 = vrot.slane %v4289_v15, %v4331_v27  ;;  %v2512_v34 = vrot.slane %v3229_v51, %v4206_v56  ;;  %v2502_v51 = vrot.slane %v4293_v52, %v4369_v31 }
 0x5ca   :  { %v4348_v55 = vpop.eup %3232  ;;  %3252 = vrcp.f32 %v4279_v45  ;;  %v2497_v45 = vrot.slane %v4307_v37, %v4339_v33  ;;  %v2507_v52 = vrot.slane %v4300_v16, %v4383_v6 }
 0x5cb   :  { %v4351_v62 = vpop.eup %3234  ;;  %3254 = vrcp.f32 %v878_v0  ;;  %v2516_v0 = vrot.slane %v3231_v18, %v4209_v49  ;;  %v2488_v15 = vsel %vm1285_vm7, %v2487_v53, %v2483_v58 }
 0x5cc   :  { %v4357_v13 = vpop.eup %3236  ;;  %3256 = vrcp.f32 %v881_v5  ;;  %v4361_v50 = vpop.xlane.xlu1 %901  ;;  %v2493_v2 = vsel %vm1292_vm8, %v2492_v44, %v2488_v15 }
 0x5cd   :  { %v4365_v47 = vpop.eup %3238  ;;  %3258 = vrcp.f32 %v884_v41  ;;  %v932_v7 = vpop.xlane.xlu0 %931 }
 0x5ce   :  { %v4371_v3 = vpop.eup %3240  ;;  %3260 = vrcp.f32 %v4283_v46  ;;  %v2498_v46 = vsel %vm1299_vm9, %v2497_v45, %v2493_v2 }
 0x5cf   :  { %v3243_v5 = vpop.eup %3242  ;;  %3262 = vrcp.f32 %v4291_v43  ;;  %v2517_v43 = vsel %vm1271_vm5, %v2516_v0, %v2512_v34  ;;  %v2503_v54 = vsel %vm1306_vm10, %v2502_v51, %v2498_v46 }
 0x5d0   :  { %v4378_v37 = vpop.eup %3244  ;;  %3264 = vrcp.f32 %v929_v10  ;;  %v4380_v63 = vpop.xlane.xlu1 %949  ;;  %v2521_v10 = vrot.slane %v4315_v14, %v4318_v57  ;;  %v2531_v29 = vrot.slane %v3243_v5, %v4334_v59  ;;  %v2526_v14 = vrot.slane %v4321_v24, %v4331_v27 }
 0x5d1   :  { %v3247_v22 = vpop.eup %3246  ;;  %3266 = vrcp.f32 %v932_v7  ;;  %v887_v8 = vpop.xlane.xlu0 %886  ;;  %v2508_v0 = vsel %vm1313_vm11, %v2507_v52, %v2503_v54 }
 0x5d2   :  { %v3249_v36 = vpop.eup %3248  ;;  %3268 = vrcp.f32 %v887_v8  ;;  %v2522_v44 = vsel %vm1278_vm6, %v2521_v10, %v2517_v43  ;;  %v2536_v58 = vrot.slane %v3247_v22, %v4339_v33 }
 0x5d3   :  { %v3251_v18 = vpop.eup %3250  ;;  %3270 = vrcp.f32 %v4244_v9  ;;  %v1277_v45 = vrot.slane %v3249_v36, %v4318_v57  ;;  %v2527_v24 = vsel %vm1285_vm7, %v2526_v14, %v2522_v44  ;;  %v2541_v36 = vrot.slane %v4365_v47, %v4369_v31 }
 0x5d4   :  { %v3253_v11 = vpop.eup %3252  ;;  %3272 = vrcp.f32 %v4248_v17  ;;  %v905_v41 = vpop.xlane.xlu1 %904  ;;  %v2532_v22 = vsel %vm1292_vm8, %v2531_v29, %v2527_v24  ;;  %v1366_v54 = vrot.slane %v3251_v18, %v4318_v57 }
 0x5d5   :  { %v3255_v25 = vpop.eup %3254  ;;  %3274 = vrcp.f32 %v4252_v28  ;;  %v935_v9 = vpop.xlane.xlu0 %934  ;;  %v1284_v16 = vrot.slane %v3253_v11, %v4331_v27  ;;  %v2537_v43 = vsel %vm1299_vm9, %v2536_v58, %v2532_v22  ;;  %v1279_v10 = vsel %vm1278_vm6, %v1277_v45, %v4220_v1 }
 0x5d6   :  { %v3257_v53 = vpop.eup %3256  ;;  %3276 = vrcp.f32 %v935_v9  ;;  %v2229_v17 = vpop.f32.mrb[44].mxu0  ;;  %v1291_v34 = vrot.slane %v3255_v25, %v4334_v59  ;;  %v2542_v25 = vsel %vm1306_vm10, %v2541_v36, %v2537_v43  ;;  %v2555_v22 = vrot.slane %v4351_v62, %v4209_v49  ;;  %v4613_v62 = vld [vmem:[#allocation16_spill] sm:$0xff] }
 0x5d7   :  { %v3259_v7 = vpop.eup %3258  ;;  %3278 = vrcp.f32 %v4254_v32  ;;  %v2654_v15 = vmul.f32 %v2508_v0, %v2229_v17  ;;  %v3006_v5 = vpop.f32.mrb[45].mxu0  ;;  %v1298_v32 = vrot.slane %v3257_v53, %v4339_v33  ;;  %v1286_v29 = vsel %vm1285_vm7, %v1284_v16, %v1279_v10 }
 0x5d8   :  { %v3261_v28 = vpop.eup %3260  ;;  %3280 = vrcp.f32 %v4256_v30  ;;  %v953_v2 = vpop.xlane.xlu1 %952  ;;  %v1293_v1 = vsel %vm1292_vm8, %v1291_v34, %v1286_v29  ;;  %v2546_v0 = vrot.slane %v4378_v37, %v4383_v6  ;;  %v2551_v10 = vrot.slane %v4348_v55, %v4206_v56 }
 0x5d9   :  { %v2232_v46 = vpop.f32.mrb[46].mxu0  ;;  %v3263_v8 = vpop.eup %3262  ;;  %3282 = vrcp.f32 %v4258_v60  ;;  %2662 = vrot.lane.b32.xlu0 %v2654_v15, %s3323_s19  ;;  %v1305_v60 = vrot.slane %v3259_v7, %v4369_v31  ;;  %v1371_v52 = vrot.slane %v3261_v28, %v4331_v27 }
 0x5da   :  { %v3007_v51 = vpop.f32.mrb[47].mxu0  ;;  %v3265_v30 = vpop.eup %3264  ;;  %3284 = vrcp.f32 %v4262_v23  ;;  %v1376_v47 = vrot.slane %v3263_v8, %v4334_v59 }
 0x5db   :  { %v3267_v11 = vpop.eup %3266  ;;  %3286 = vrcp.f32 %v4287_v35  ;;  %v1381_v14 = vrot.slane %v3265_v30, %v4339_v33  ;;  %v1300_v35 = vsel %vm1299_vm9, %v1298_v32, %v1293_v1  ;;  %v2565_v1 = vrot.slane %v4357_v13, %v4331_v27 }
 0x5dc   :  { %v3269_v44 = vpop.eup %3268  ;;  %3288 = vrcp.f32 %v4297_v12  ;;  %v908_v23 = vpop.xlane.xlu1 %907  ;;  %v1367_v12 = vsel %vm1278_vm6, %v1366_v54, %v4275_v21  ;;  %v1386_v53 = vrot.slane %v3267_v11, %v4369_v31  ;;  %v1307_v45 = vsel %vm1306_vm10, %v1305_v60, %v1300_v35  ;;  %v4612_v21 = vld [vmem:[#allocation15_spill] sm:$0xff] }
 0x5dd   :  { %v4428_v18 = vpop.eup %3270  ;;  %3290 = vrcp.f32 %v4313_v42  ;;  %v1312_v9 = vrot.slane %v3269_v44, %v4383_v6  ;;  %v1372_v42 = vsel %vm1285_vm7, %v1371_v52, %v1367_v12  ;;  %v2560_v44 = vrot.slane %v4328_v26, %v4318_v57 }
 0x5de   :  { %v4434_v58 = vpop.eup %3272  ;;  %3292 = vrcp.f32 %v4361_v50  ;;  %v1377_v50 = vsel %vm1292_vm8, %v1376_v47, %v1372_v42  ;;  %v2570_v26 = vrot.slane %v4428_v18, %v4334_v59 }
 0x5df   :  { %v4441_v17 = vpop.eup %3274  ;;  %3294 = vrcp.f32 %v905_v41  ;;  %v1314_v7 = vsel %vm1313_vm11, %v1312_v9, %v1307_v45  ;;  %v2547_v41 = vsel %vm1313_vm11, %v2546_v0, %v2542_v25  ;;  %v1382_v37 = vsel %vm1299_vm9, %v1381_v14, %v1377_v50 }
 0x5e0   :  { %v3277_v16 = vpop.eup %3276  ;;  %3296 = vrcp.f32 %v908_v23  ;;  %v956_v15 = vpop.xlane.xlu1 %955  ;;  %v4448_v5 = vmul.f32 %v1314_v7, %v4612_v21  ;;  %v1387_v51 = vsel %vm1306_vm10, %v1386_v53, %v1382_v37  ;;  %v2575_v42 = vrot.slane %v4441_v17, %v4339_v33 }
 0x5e1   :  { %v3279_v24 = vpop.eup %3278  ;;  %3298 = vrcp.f32 %v4341_v61  ;;  %v1391_v28 = vrot.slane %v3277_v16, %v4383_v6  ;;  %v2286_v34 = vpop.f32.mrb[48].mxu1 }
 0x5e2   :  { %v4455_v46 = vpop.eup %3280  ;;  %3300 = vrcp.f32 %v4380_v63  ;;  %v2655_v8 = vmul.f32 %v2547_v41, %v2286_v34  ;;  %v3018_v32 = vpop.f32.mrb[49].mxu1 }
 0x5e3   :  { %v3283_v43 = vpop.eup %3282  ;;  %3302 = vrcp.f32 %v953_v2  ;;  %v2289_v61 = vpop.f32.mrb[50].mxu1  ;;  %v1392_v36 = vsel %vm1313_vm11, %v1391_v28, %v1387_v51  ;;  %v2556_v2 = vsel %vm1271_vm5, %v2555_v22, %v2551_v10  ;;  %v2580_v28 = vrot.slane %v4371_v3, %v4369_v31 }
 0x5e4   :  { %v4462_v30 = vpop.eup %3284  ;;  %3304 = vrcp.f32 %v956_v15  ;;  %v3019_v54 = vpop.f32.mrb[51].mxu1  ;;  %2664 = vrot.lane.b32.xlu1 %v2655_v8, %s3323_s19  ;;  %v4468_v63 = vmul.f32 %v1392_v36, %v4613_v62  ;;  %v1318_v47 = vrot.slane %v3283_v43, %v4206_v56  ;;  %v2561_v14 = vsel %vm1278_vm6, %v2560_v44, %v2556_v2 }
 0x5e5   :  { %v911_v60 = vpop.xlane.xlu1 %910  ;;  %v3287_v11 = vpop.eup %3286  ;;  %v2566_v16 = vsel %vm1285_vm7, %v2565_v1, %v2561_v14  ;;  %v2594_v34 = vrot.slane %v4462_v30, %v4209_v49  ;;  %v2590_v61 = vrot.slane %v4455_v46, %v4206_v56  ;;  %v4614_v56 = vld [vmem:[#allocation17_spill] sm:$0xff] }
 0x5e6   :  { %3306 = vrcp.f32 %v911_v60  ;;  %v3289_v29 = vpop.eup %3288 }
 0x5e7   :  { %3308 = vrcp.f32 %v4250_v39  ;;  %v3291_v52 = vpop.eup %3290  ;;  %v1327_v39 = vrot.slane %v3287_v11, %v4318_v57  ;;  %v1405_v7 = vrot.slane %v3289_v29, %v4318_v57  ;;  %v2595_v11 = vsel %vm1271_vm5, %v2594_v34, %v2590_v61 }
 0x5e8   :  { %3310 = vrcp.f32 %v4260_v20  ;;  %v3293_v55 = vpop.eup %3292  ;;  %v1322_v20 = vrot.slane %v3279_v24, %v4209_v49  ;;  %v2571_v24 = vsel %vm1292_vm8, %v2570_v26, %v2566_v16 }
 0x5e9   :  { %3312 = vrcp.f32 %v4268_v48  ;;  %v959_v23 = vpop.xlane.xlu1 %958  ;;  %v3295_v25 = vpop.eup %3294  ;;  %v1332_v48 = vrot.slane %v3291_v52, %v4331_v27  ;;  %v1337_v12 = vrot.slane %v3293_v55, %v4334_v59  ;;  %v2576_v51 = vsel %vm1299_vm9, %v2575_v42, %v2571_v24 }
 0x5ea   :  { %3314 = vrcp.f32 %v959_v23  ;;  %v3297_v9 = vpop.eup %3296  ;;  %v1323_v13 = vsel %vm1271_vm5, %v1322_v20, %v1318_v47  ;;  %v1342_v45 = vrot.slane %v3295_v25, %v4339_v33  ;;  %v1406_v49 = vsel %vm1278_vm6, %v1405_v7, %v4326_v40 }
 0x5eb   :  { %3316 = vrcp.f32 %v4281_v4  ;;  %v3299_v35 = vpop.eup %3298  ;;  %v1328_v18 = vsel %vm1278_vm6, %v1327_v39, %v1323_v13  ;;  %v1347_v4 = vrot.slane %v3297_v9, %v4369_v31  ;;  %v2581_v62 = vsel %vm1306_vm10, %v2580_v28, %v2576_v51 }
 0x5ec   :  { %v3301_v53 = vpop.eup %3300  ;;  %v1333_v21 = vsel %vm1285_vm7, %v1332_v48, %v1328_v18  ;;  %v1410_v50 = vrot.slane %v3299_v35, %v4331_v27  ;;  %3318 = vrcp.f32 %v4264_v38 }
 0x5ed   :  { %v3303_v0 = vpop.eup %3302  ;;  %v1415_v41 = vrot.slane %v3301_v53, %v4334_v59  ;;  %v1338_v37 = vsel %vm1292_vm8, %v1337_v12, %v1333_v21  ;;  %3320 = vrcp.f32 %v4277_v19  ;;  %v2585_v19 = vrot.slane %v4434_v58, %v4383_v6  ;;  %v4615_v58 = vld [vmem:[#allocation18_spill] sm:$0xff] }
 0x5ee   :  { %v3305_v15 = vpop.eup %3304  ;;  %v1420_v8 = vrot.slane %v3303_v0, %v4339_v33  ;;  %v1343_v43 = vsel %vm1299_vm9, %v1342_v45, %v1338_v37  ;;  %v1411_v10 = vsel %vm1285_vm7, %v1410_v50, %v1406_v49 }
 0x5ef   :  { %v1425_v38 = vrot.slane %v3305_v15, %v4369_v31  ;;  %v1348_v36 = vsel %vm1306_vm10, %v1347_v4, %v1343_v43  ;;  %v1416_v40 = vsel %vm1292_vm8, %v1415_v41, %v1411_v10  ;;  %v2586_v25 = vsel %vm1313_vm11, %v2585_v19, %v2581_v62 }
 0x5f0   :  { %v3307_v17 = vpop.eup %3306  ;;  %v1421_v44 = vsel %vm1299_vm9, %v1420_v8, %v1416_v40 }
 0x5f1   :  { %v3309_v22 = vpop.eup %3308  ;;  %v1352_v32 = vrot.slane %v3307_v17, %v4383_v6  ;;  %v1426_v55 = vsel %vm1306_vm10, %v1425_v38, %v1421_v44 }
 0x5f2   :  { %v3311_v3 = vpop.eup %3310  ;;  %v2599_v2 = vrot.slane %v3309_v22, %v4318_v57 }
 0x5f3   :  { %v3313_v30 = vpop.eup %3312  ;;  %v1353_v54 = vsel %vm1313_vm11, %v1352_v32, %v1348_v36  ;;  %v2604_v57 = vrot.slane %v3311_v3, %v4331_v27 }
 0x5f4   :  { %v3315_v60 = vpop.eup %3314  ;;  %v1467_v46 = vmul.f32 %v1353_v54, %v4614_v56  ;;  %v2609_v47 = vrot.slane %v3313_v30, %v4334_v59  ;;  %v2600_v1 = vsel %vm1278_vm6, %v2599_v2, %v2595_v11 }
 0x5f5   :  { %v3317_v29 = vpop.eup %3316  ;;  %v1430_v52 = vrot.slane %v3315_v60, %v4383_v6  ;;  %v2605_v59 = vsel %vm1285_vm7, %v2604_v57, %v2600_v1 }
 0x5f6   :  { %v2343_v23 = vpop.f32.mrb[48].mxu0  ;;  %v2614_v26 = vrot.slane %v3317_v29, %v4339_v33  ;;  %v3319_v35 = vpop.eup %3318  ;;  %v2610_v53 = vsel %vm1292_vm8, %v2609_v47, %v2605_v59 }
 0x5f7   :  { %v1431_v39 = vsel %vm1313_vm11, %v1430_v52, %v1426_v55  ;;  %v2656_v14 = vmul.f32 %v2586_v25, %v2343_v23  ;;  %v3030_v9 = vpop.f32.mrb[49].mxu0  ;;  %v3321_v45 = vpop.eup %3320  ;;  %v2619_v27 = vrot.slane %v3319_v35, %v4369_v31 }
 0x5f8   :  { %v1469_v20 = vmul.f32 %v1431_v39, %v4615_v58  ;;  %v2346_v48 = vpop.f32.mrb[50].mxu0  ;;  %v2615_v13 = vsel %vm1299_vm9, %v2614_v26, %v2610_v53  ;;  %v2624_v33 = vrot.slane %v3321_v45, %v4383_v6 }
 0x5f9   :  { %v3031_v12 = vpop.f32.mrb[51].mxu0  ;;  %2666 = vrot.lane.b32.xlu1 %v2656_v14, %s3323_s19  ;;  %v2620_v42 = vsel %vm1306_vm10, %v2619_v27, %v2615_v13 }
 0x5fa   :  { %v2625_v18 = vsel %vm1313_vm11, %v2624_v33, %v2620_v42 }
 0x601   :  { %v2400_v0 = vpop.f32.mrb[52].mxu1 }
 0x602   :  { %v2657_v7 = vmul.f32 %v2625_v18, %v2400_v0  ;;  %v3042_v4 = vpop.f32.mrb[53].mxu1 }
 0x603   :  { %v2403_v16 = vpop.f32.mrb[54].mxu1 }
 0x604   :  { %v3043_v15 = vpop.f32.mrb[55].mxu1  ;;  %2668 = vrot.lane.b32.xlu0 %v2657_v7, %s3323_s19 }
 0x64b   :  { %v2663_v21 = vpop.permute.xlu0 %2662 }
 0x64c   :  { %v2674_v50 = vsel %vm671_vm3, %v4448_v5, %v2663_v21 }
 0x64d   :  { %2678 = vst [vmem:[%s4565_s3] sm:$0xff] %v2674_v50 }
 0x656   :  { %v2665_v31 = vpop.permute.xlu1 %2664 }
 0x657   :  { %v2675_v6 = vsel %vm671_vm3, %v1467_v46, %v2665_v31 }
 0x658   :  { %2679 = vst [vmem:[%s4565_s3 + $0x8] sm:$0xff] %v2675_v6 }
 0x66b   :  { %v2667_v24 = vpop.permute.xlu1 %2666 }
 0x66c   :  { %v2676_v28 = vsel %vm671_vm3, %v4468_v63, %v2667_v24 }
 0x66d   :  { %2680 = vst [vmem:[%s4565_s3 + $0x10] sm:$0xff] %v2676_v28 }
 0x676   :  { %v2669_v5 = vpop.permute.xlu0 %2668 }
 0x677   :  { %v2677_v17 = vsel %vm671_vm3, %v1469_v20, %v2669_v5 }
 0x678   :  { %2681 = vst [vmem:[%s4565_s3 + $0x18] sm:$0xff] %v2677_v17 }

</bundles_post_ra>
